<compile_context>
chip_gen: v7x
topology: tpu7x:2x2x1
jax: 0.10.0
libtpu: 0.0.40
codegen_flags: <defaults>
</compile_context>

<pallas_src>
import jax
import jax.numpy as jnp
from jax.experimental import pallas as pl
from jax.experimental.pallas import tpu as pltpu


def _make_fused_kernel(n_batch, c_out, hw, p_dim):
    """Fused conv(as matmul, bias folded) + exp + NCHW-flatten mm kernel."""

    def kernel(p_ref, w_ref, x2_ref, o_ref, e_ref):
        # p_ref : (N, KA, HW)  per-sample im2col patches, ones row appended (KA=10)
        # w_ref : (C, KA)      conv weights with bias column appended
        # x2_ref: (C, HW, P)   x2 pre-reshaped c-major in the wrapper
        # o_ref : (N, P)
        # e_ref : VMEM scratch (N, C, HW) f32 — exp'd conv activation

        # ---- conv as matmul (+ fused bias) + exp: one MXU dot per sample ----
        for n in range(n_batch):
            conv_n = jnp.dot(w_ref[...], p_ref[n],
                             preferred_element_type=jnp.float32)    # (C, HW)
            e_ref[n] = jnp.exp(conv_n)                               # clean full store

        # ---- second matmul: out = sum_c e[:, c, :] @ x2[c] ------------------
        # C_out dots of (N,HW)@(HW,P) into ONE accumulator; all operands are
        # static ref slices (no relayout of live vregs).
        acc = jnp.zeros((n_batch, p_dim), jnp.float32)
        for c in range(c_out):
            acc = acc + jnp.dot(e_ref[:, c, :], x2_ref[c],
                                preferred_element_type=jnp.float32)
        o_ref[...] = acc

    return kernel


@jax.jit
def conv_exp_mm(x1, conv_w, conv_b, x2):
    """x1: (N,1,H,W) f32, conv_w: (32,1,3,3), conv_b: (32,), x2: (32*Ho*Wo, P)."""
    N, cin, H, W = x1.shape
    assert cin == 1
    C_out, _, KH, KW = conv_w.shape
    Ho, Wo = H - KH + 1, W - KW + 1
    HW = Ho * Wo
    P = x2.shape[1]
    assert x2.shape[0] == C_out * HW

    # --- glue (fused under jit): per-sample im2col + ones row for bias -------
    rows = []
    for di in range(KH):
        for dj in range(KW):
            rows.append(x1[:, 0, di:di + Ho, dj:dj + Wo].reshape(N, 1, HW))
    rows.append(jnp.ones((N, 1, HW), x1.dtype))                  # bias row
    patches_b = jnp.concatenate(rows, axis=1)                    # (N, KH*KW+1, HW)

    w_aug = jnp.concatenate(
        [conv_w.reshape(C_out, KH * KW), conv_b.reshape(C_out, 1)], axis=1
    )                                                            # (C, KH*KW+1)

    x2_r = x2.reshape(C_out, HW, P)                              # (C, HW, P), free reshape

    kernel = _make_fused_kernel(N, C_out, HW, P)
    out = pl.pallas_call(
        kernel,
        out_shape=jax.ShapeDtypeStruct((N, P), jnp.float32),
        in_specs=[
            pl.BlockSpec(memory_space=pltpu.MemorySpace.VMEM),
            pl.BlockSpec(memory_space=pltpu.MemorySpace.VMEM),
            pl.BlockSpec(memory_space=pltpu.MemorySpace.VMEM),
        ],
        out_specs=pl.BlockSpec(memory_space=pltpu.MemorySpace.VMEM),
        scratch_shapes=[pltpu.VMEM((N, C_out, HW), jnp.float32)],
    )(patches_b, w_aug, x2_r)
    return out


if __name__ == "__main__":
    key = jax.random.PRNGKey(0)
    k_x1, k_x2, k_w, k_b = jax.random.split(key, 4)

    # small shapes consistent with the module: N=2, Cin=1, H=W=10, kernel 3x3
    N, H, W = 2, 10, 10
    C_out, KH, KW = 32, 3, 3
    Ho, Wo = H - KH + 1, W - KW + 1
    K2 = C_out * Ho * Wo          # 32*8*8 = 2048 (matches conv-output flatten)
    P = 16

    x1 = jax.random.normal(k_x1, (N, 1, H, W), dtype=jnp.float32)
    x2 = jax.random.normal(k_x2, (K2, P), dtype=jnp.float32)
    conv_w = 0.1 * jax.random.normal(k_w, (C_out, 1, KH, KW), dtype=jnp.float32)
    conv_b = 0.1 * jax.random.normal(k_b, (C_out,), dtype=jnp.float32)

    out = jax.block_until_ready(conv_exp_mm(x1, conv_w, conv_b, x2))

    # pure-JAX reference for sanity
    t1 = jax.lax.conv_general_dilated(
        x1, conv_w, window_strides=(1, 1), padding="VALID",
        dimension_numbers=("NCHW", "OIHW", "NCHW"),
    ) + conv_b[None, :, None, None]
    ref = jnp.exp(t1).reshape(N, K2) @ x2
    assert out.shape == (N, P)
    assert jnp.allclose(out, ref, rtol=1e-4, atol=1e-3), "mismatch vs reference"

    print("KERNEL_OK")
</pallas_src>

<mosaic_0001>
module attributes {stable_mosaic.version = 11 : i64} {
  func.func @kernel(%arg0: memref<2x10x64xf32, #tpu.memory_space<vmem>>, %arg1: memref<32x10xf32, #tpu.memory_space<vmem>>, %arg2: memref<32x64x16xf32, #tpu.memory_space<vmem>>, %arg3: memref<2x16xf32, #tpu.memory_space<vmem>>, %arg4: memref<2x32x64xf32, #tpu.memory_space<vmem>>) attributes {dimension_semantics = [], scalar_prefetch = 0 : i64, scratch_operands = 1 : i64, tpu.core_type = #tpu.core_type<tc>} {
    %c0 = arith.constant 0 : index
    %c0_0 = arith.constant 0 : index
    %0 = vector.load %arg1[%c0, %c0_0] : memref<32x10xf32, #tpu.memory_space<vmem>>, vector<32x10xf32>
    %c0_1 = arith.constant 0 : index
    %c0_2 = arith.constant 0 : index
    %c0_3 = arith.constant 0 : index
    %1 = vector.load %arg0[%c0_1, %c0_2, %c0_3] : memref<2x10x64xf32, #tpu.memory_space<vmem>>, vector<1x10x64xf32>
    %2 = vector.shape_cast %1 : vector<1x10x64xf32> to vector<10x64xf32>
    %cst = arith.constant dense<0.000000e+00> : vector<32x64xf32>
    %3 = tpu.matmul %0, %2, %cst {dimension_numbers = #tpu.dot_dimension_numbers<[1], [0], [0], [1], [0, 0, 1, 1], [], []>} : vector<32x10xf32>, vector<10x64xf32>, vector<32x64xf32> -> vector<32x64xf32>
    %4 = math.exp %3 : vector<32x64xf32>
    %c0_4 = arith.constant 0 : index
    %c0_5 = arith.constant 0 : index
    %c0_6 = arith.constant 0 : index
    %5 = vector.load %arg4[%c0_4, %c0_5, %c0_6] : memref<2x32x64xf32, #tpu.memory_space<vmem>>, vector<1x32x64xf32>
    %6 = vector.shape_cast %5 : vector<1x32x64xf32> to vector<32x64xf32>
    %7 = vector.shape_cast %4 : vector<32x64xf32> to vector<1x32x64xf32>
    tpu.vector_store %arg4[%c0_4, %c0_5, %c0_6], %7 {strides = array<i32>} : memref<2x32x64xf32, #tpu.memory_space<vmem>>, vector<1x32x64xf32>,
    %c0_7 = arith.constant 0 : index
    %c0_8 = arith.constant 0 : index
    %8 = vector.load %arg1[%c0_7, %c0_8] : memref<32x10xf32, #tpu.memory_space<vmem>>, vector<32x10xf32>
    %c1 = arith.constant 1 : index
    %c0_9 = arith.constant 0 : index
    %c0_10 = arith.constant 0 : index
    %9 = vector.load %arg0[%c1, %c0_9, %c0_10] : memref<2x10x64xf32, #tpu.memory_space<vmem>>, vector<1x10x64xf32>
    %10 = vector.shape_cast %9 : vector<1x10x64xf32> to vector<10x64xf32>
    %cst_11 = arith.constant dense<0.000000e+00> : vector<32x64xf32>
    %11 = tpu.matmul %8, %10, %cst_11 {dimension_numbers = #tpu.dot_dimension_numbers<[1], [0], [0], [1], [0, 0, 1, 1], [], []>} : vector<32x10xf32>, vector<10x64xf32>, vector<32x64xf32> -> vector<32x64xf32>
    %12 = math.exp %11 : vector<32x64xf32>
    %c1_12 = arith.constant 1 : index
    %c0_13 = arith.constant 0 : index
    %c0_14 = arith.constant 0 : index
    %13 = vector.load %arg4[%c1_12, %c0_13, %c0_14] : memref<2x32x64xf32, #tpu.memory_space<vmem>>, vector<1x32x64xf32>
    %14 = vector.shape_cast %13 : vector<1x32x64xf32> to vector<32x64xf32>
    %15 = vector.shape_cast %12 : vector<32x64xf32> to vector<1x32x64xf32>
    tpu.vector_store %arg4[%c1_12, %c0_13, %c0_14], %15 {strides = array<i32>} : memref<2x32x64xf32, #tpu.memory_space<vmem>>, vector<1x32x64xf32>,
    %cst_15 = arith.constant 0.000000e+00 : f32
    %16 = vector.broadcast %cst_15 : f32 to vector<2x16xf32>
    %c0_16 = arith.constant 0 : index
    %c0_17 = arith.constant 0 : index
    %c0_18 = arith.constant 0 : index
    %17 = vector.load %arg4[%c0_16, %c0_17, %c0_18] : memref<2x32x64xf32, #tpu.memory_space<vmem>>, vector<2x1x64xf32>
    %18 = vector.shape_cast %17 : vector<2x1x64xf32> to vector<2x64xf32>
    %c0_19 = arith.constant 0 : index
    %c0_20 = arith.constant 0 : index
    %c0_21 = arith.constant 0 : index
    %19 = vector.load %arg2[%c0_19, %c0_20, %c0_21] : memref<32x64x16xf32, #tpu.memory_space<vmem>>, vector<1x64x16xf32>
    %20 = vector.shape_cast %19 : vector<1x64x16xf32> to vector<64x16xf32>
    %cst_22 = arith.constant dense<0.000000e+00> : vector<2x16xf32>
    %21 = tpu.matmul %18, %20, %cst_22 {dimension_numbers = #tpu.dot_dimension_numbers<[1], [0], [0], [1], [0, 0, 1, 1], [], []>} : vector<2x64xf32>, vector<64x16xf32>, vector<2x16xf32> -> vector<2x16xf32>
    %22 = arith.addf %16, %21 : vector<2x16xf32>
    %c0_23 = arith.constant 0 : index
    %c1_24 = arith.constant 1 : index
    %c0_25 = arith.constant 0 : index
    %23 = vector.load %arg4[%c0_23, %c1_24, %c0_25] : memref<2x32x64xf32, #tpu.memory_space<vmem>>, vector<2x1x64xf32>
    %24 = vector.shape_cast %23 : vector<2x1x64xf32> to vector<2x64xf32>
    %c1_26 = arith.constant 1 : index
    %c0_27 = arith.constant 0 : index
    %c0_28 = arith.constant 0 : index
    %25 = vector.load %arg2[%c1_26, %c0_27, %c0_28] : memref<32x64x16xf32, #tpu.memory_space<vmem>>, vector<1x64x16xf32>
    %26 = vector.shape_cast %25 : vector<1x64x16xf32> to vector<64x16xf32>
    %cst_29 = arith.constant dense<0.000000e+00> : vector<2x16xf32>
    %27 = tpu.matmul %24, %26, %cst_29 {dimension_numbers = #tpu.dot_dimension_numbers<[1], [0], [0], [1], [0, 0, 1, 1], [], []>} : vector<2x64xf32>, vector<64x16xf32>, vector<2x16xf32> -> vector<2x16xf32>
    %28 = arith.addf %22, %27 : vector<2x16xf32>
    %c0_30 = arith.constant 0 : index
    %c2 = arith.constant 2 : index
    %c0_31 = arith.constant 0 : index
    %29 = vector.load %arg4[%c0_30, %c2, %c0_31] : memref<2x32x64xf32, #tpu.memory_space<vmem>>, vector<2x1x64xf32>
    %30 = vector.shape_cast %29 : vector<2x1x64xf32> to vector<2x64xf32>
    %c2_32 = arith.constant 2 : index
    %c0_33 = arith.constant 0 : index
    %c0_34 = arith.constant 0 : index
    %31 = vector.load %arg2[%c2_32, %c0_33, %c0_34] : memref<32x64x16xf32, #tpu.memory_space<vmem>>, vector<1x64x16xf32>
    %32 = vector.shape_cast %31 : vector<1x64x16xf32> to vector<64x16xf32>
    %cst_35 = arith.constant dense<0.000000e+00> : vector<2x16xf32>
    %33 = tpu.matmul %30, %32, %cst_35 {dimension_numbers = #tpu.dot_dimension_numbers<[1], [0], [0], [1], [0, 0, 1, 1], [], []>} : vector<2x64xf32>, vector<64x16xf32>, vector<2x16xf32> -> vector<2x16xf32>
    %34 = arith.addf %28, %33 : vector<2x16xf32>
    %c0_36 = arith.constant 0 : index
    %c3 = arith.constant 3 : index
    %c0_37 = arith.constant 0 : index
    %35 = vector.load %arg4[%c0_36, %c3, %c0_37] : memref<2x32x64xf32, #tpu.memory_space<vmem>>, vector<2x1x64xf32>
    %36 = vector.shape_cast %35 : vector<2x1x64xf32> to vector<2x64xf32>
    %c3_38 = arith.constant 3 : index
    %c0_39 = arith.constant 0 : index
    %c0_40 = arith.constant 0 : index
    %37 = vector.load %arg2[%c3_38, %c0_39, %c0_40] : memref<32x64x16xf32, #tpu.memory_space<vmem>>, vector<1x64x16xf32>
    %38 = vector.shape_cast %37 : vector<1x64x16xf32> to vector<64x16xf32>
    %cst_41 = arith.constant dense<0.000000e+00> : vector<2x16xf32>
    %39 = tpu.matmul %36, %38, %cst_41 {dimension_numbers = #tpu.dot_dimension_numbers<[1], [0], [0], [1], [0, 0, 1, 1], [], []>} : vector<2x64xf32>, vector<64x16xf32>, vector<2x16xf32> -> vector<2x16xf32>
    %40 = arith.addf %34, %39 : vector<2x16xf32>
    %c0_42 = arith.constant 0 : index
    %c4 = arith.constant 4 : index
    %c0_43 = arith.constant 0 : index
    %41 = vector.load %arg4[%c0_42, %c4, %c0_43] : memref<2x32x64xf32, #tpu.memory_space<vmem>>, vector<2x1x64xf32>
    %42 = vector.shape_cast %41 : vector<2x1x64xf32> to vector<2x64xf32>
    %c4_44 = arith.constant 4 : index
    %c0_45 = arith.constant 0 : index
    %c0_46 = arith.constant 0 : index
    %43 = vector.load %arg2[%c4_44, %c0_45, %c0_46] : memref<32x64x16xf32, #tpu.memory_space<vmem>>, vector<1x64x16xf32>
    %44 = vector.shape_cast %43 : vector<1x64x16xf32> to vector<64x16xf32>
    %cst_47 = arith.constant dense<0.000000e+00> : vector<2x16xf32>
    %45 = tpu.matmul %42, %44, %cst_47 {dimension_numbers = #tpu.dot_dimension_numbers<[1], [0], [0], [1], [0, 0, 1, 1], [], []>} : vector<2x64xf32>, vector<64x16xf32>, vector<2x16xf32> -> vector<2x16xf32>
    %46 = arith.addf %40, %45 : vector<2x16xf32>
    %c0_48 = arith.constant 0 : index
    %c5 = arith.constant 5 : index
    %c0_49 = arith.constant 0 : index
    %47 = vector.load %arg4[%c0_48, %c5, %c0_49] : memref<2x32x64xf32, #tpu.memory_space<vmem>>, vector<2x1x64xf32>
    %48 = vector.shape_cast %47 : vector<2x1x64xf32> to vector<2x64xf32>
    %c5_50 = arith.constant 5 : index
    %c0_51 = arith.constant 0 : index
    %c0_52 = arith.constant 0 : index
    %49 = vector.load %arg2[%c5_50, %c0_51, %c0_52] : memref<32x64x16xf32, #tpu.memory_space<vmem>>, vector<1x64x16xf32>
    %50 = vector.shape_cast %49 : vector<1x64x16xf32> to vector<64x16xf32>
    %cst_53 = arith.constant dense<0.000000e+00> : vector<2x16xf32>
    %51 = tpu.matmul %48, %50, %cst_53 {dimension_numbers = #tpu.dot_dimension_numbers<[1], [0], [0], [1], [0, 0, 1, 1], [], []>} : vector<2x64xf32>, vector<64x16xf32>, vector<2x16xf32> -> vector<2x16xf32>
    %52 = arith.addf %46, %51 : vector<2x16xf32>
    %c0_54 = arith.constant 0 : index
    %c6 = arith.constant 6 : index
    %c0_55 = arith.constant 0 : index
    %53 = vector.load %arg4[%c0_54, %c6, %c0_55] : memref<2x32x64xf32, #tpu.memory_space<vmem>>, vector<2x1x64xf32>
    %54 = vector.shape_cast %53 : vector<2x1x64xf32> to vector<2x64xf32>
    %c6_56 = arith.constant 6 : index
    %c0_57 = arith.constant 0 : index
    %c0_58 = arith.constant 0 : index
    %55 = vector.load %arg2[%c6_56, %c0_57, %c0_58] : memref<32x64x16xf32, #tpu.memory_space<vmem>>, vector<1x64x16xf32>
    %56 = vector.shape_cast %55 : vector<1x64x16xf32> to vector<64x16xf32>
    %cst_59 = arith.constant dense<0.000000e+00> : vector<2x16xf32>
    %57 = tpu.matmul %54, %56, %cst_59 {dimension_numbers = #tpu.dot_dimension_numbers<[1], [0], [0], [1], [0, 0, 1, 1], [], []>} : vector<2x64xf32>, vector<64x16xf32>, vector<2x16xf32> -> vector<2x16xf32>
    %58 = arith.addf %52, %57 : vector<2x16xf32>
    %c0_60 = arith.constant 0 : index
    %c7 = arith.constant 7 : index
    %c0_61 = arith.constant 0 : index
    %59 = vector.load %arg4[%c0_60, %c7, %c0_61] : memref<2x32x64xf32, #tpu.memory_space<vmem>>, vector<2x1x64xf32>
    %60 = vector.shape_cast %59 : vector<2x1x64xf32> to vector<2x64xf32>
    %c7_62 = arith.constant 7 : index
    %c0_63 = arith.constant 0 : index
    %c0_64 = arith.constant 0 : index
    %61 = vector.load %arg2[%c7_62, %c0_63, %c0_64] : memref<32x64x16xf32, #tpu.memory_space<vmem>>, vector<1x64x16xf32>
    %62 = vector.shape_cast %61 : vector<1x64x16xf32> to vector<64x16xf32>
    %cst_65 = arith.constant dense<0.000000e+00> : vector<2x16xf32>
    %63 = tpu.matmul %60, %62, %cst_65 {dimension_numbers = #tpu.dot_dimension_numbers<[1], [0], [0], [1], [0, 0, 1, 1], [], []>} : vector<2x64xf32>, vector<64x16xf32>, vector<2x16xf32> -> vector<2x16xf32>
    %64 = arith.addf %58, %63 : vector<2x16xf32>
    %c0_66 = arith.constant 0 : index
    %c8 = arith.constant 8 : index
    %c0_67 = arith.constant 0 : index
    %65 = vector.load %arg4[%c0_66, %c8, %c0_67] : memref<2x32x64xf32, #tpu.memory_space<vmem>>, vector<2x1x64xf32>
    %66 = vector.shape_cast %65 : vector<2x1x64xf32> to vector<2x64xf32>
    %c8_68 = arith.constant 8 : index
    %c0_69 = arith.constant 0 : index
    %c0_70 = arith.constant 0 : index
    %67 = vector.load %arg2[%c8_68, %c0_69, %c0_70] : memref<32x64x16xf32, #tpu.memory_space<vmem>>, vector<1x64x16xf32>
    %68 = vector.shape_cast %67 : vector<1x64x16xf32> to vector<64x16xf32>
    %cst_71 = arith.constant dense<0.000000e+00> : vector<2x16xf32>
    %69 = tpu.matmul %66, %68, %cst_71 {dimension_numbers = #tpu.dot_dimension_numbers<[1], [0], [0], [1], [0, 0, 1, 1], [], []>} : vector<2x64xf32>, vector<64x16xf32>, vector<2x16xf32> -> vector<2x16xf32>
    %70 = arith.addf %64, %69 : vector<2x16xf32>
    %c0_72 = arith.constant 0 : index
    %c9 = arith.constant 9 : index
    %c0_73 = arith.constant 0 : index
    %71 = vector.load %arg4[%c0_72, %c9, %c0_73] : memref<2x32x64xf32, #tpu.memory_space<vmem>>, vector<2x1x64xf32>
    %72 = vector.shape_cast %71 : vector<2x1x64xf32> to vector<2x64xf32>
    %c9_74 = arith.constant 9 : index
    %c0_75 = arith.constant 0 : index
    %c0_76 = arith.constant 0 : index
    %73 = vector.load %arg2[%c9_74, %c0_75, %c0_76] : memref<32x64x16xf32, #tpu.memory_space<vmem>>, vector<1x64x16xf32>
    %74 = vector.shape_cast %73 : vector<1x64x16xf32> to vector<64x16xf32>
    %cst_77 = arith.constant dense<0.000000e+00> : vector<2x16xf32>
    %75 = tpu.matmul %72, %74, %cst_77 {dimension_numbers = #tpu.dot_dimension_numbers<[1], [0], [0], [1], [0, 0, 1, 1], [], []>} : vector<2x64xf32>, vector<64x16xf32>, vector<2x16xf32> -> vector<2x16xf32>
    %76 = arith.addf %70, %75 : vector<2x16xf32>
    %c0_78 = arith.constant 0 : index
    %c10 = arith.constant 10 : index
    %c0_79 = arith.constant 0 : index
    %77 = vector.load %arg4[%c0_78, %c10, %c0_79] : memref<2x32x64xf32, #tpu.memory_space<vmem>>, vector<2x1x64xf32>
    %78 = vector.shape_cast %77 : vector<2x1x64xf32> to vector<2x64xf32>
    %c10_80 = arith.constant 10 : index
    %c0_81 = arith.constant 0 : index
    %c0_82 = arith.constant 0 : index
    %79 = vector.load %arg2[%c10_80, %c0_81, %c0_82] : memref<32x64x16xf32, #tpu.memory_space<vmem>>, vector<1x64x16xf32>
    %80 = vector.shape_cast %79 : vector<1x64x16xf32> to vector<64x16xf32>
    %cst_83 = arith.constant dense<0.000000e+00> : vector<2x16xf32>
    %81 = tpu.matmul %78, %80, %cst_83 {dimension_numbers = #tpu.dot_dimension_numbers<[1], [0], [0], [1], [0, 0, 1, 1], [], []>} : vector<2x64xf32>, vector<64x16xf32>, vector<2x16xf32> -> vector<2x16xf32>
    %82 = arith.addf %76, %81 : vector<2x16xf32>
    %c0_84 = arith.constant 0 : index
    %c11 = arith.constant 11 : index
    %c0_85 = arith.constant 0 : index
    %83 = vector.load %arg4[%c0_84, %c11, %c0_85] : memref<2x32x64xf32, #tpu.memory_space<vmem>>, vector<2x1x64xf32>
    %84 = vector.shape_cast %83 : vector<2x1x64xf32> to vector<2x64xf32>
    %c11_86 = arith.constant 11 : index
    %c0_87 = arith.constant 0 : index
    %c0_88 = arith.constant 0 : index
    %85 = vector.load %arg2[%c11_86, %c0_87, %c0_88] : memref<32x64x16xf32, #tpu.memory_space<vmem>>, vector<1x64x16xf32>
    %86 = vector.shape_cast %85 : vector<1x64x16xf32> to vector<64x16xf32>
    %cst_89 = arith.constant dense<0.000000e+00> : vector<2x16xf32>
    %87 = tpu.matmul %84, %86, %cst_89 {dimension_numbers = #tpu.dot_dimension_numbers<[1], [0], [0], [1], [0, 0, 1, 1], [], []>} : vector<2x64xf32>, vector<64x16xf32>, vector<2x16xf32> -> vector<2x16xf32>
    %88 = arith.addf %82, %87 : vector<2x16xf32>
    %c0_90 = arith.constant 0 : index
    %c12 = arith.constant 12 : index
    %c0_91 = arith.constant 0 : index
    %89 = vector.load %arg4[%c0_90, %c12, %c0_91] : memref<2x32x64xf32, #tpu.memory_space<vmem>>, vector<2x1x64xf32>
    %90 = vector.shape_cast %89 : vector<2x1x64xf32> to vector<2x64xf32>
    %c12_92 = arith.constant 12 : index
    %c0_93 = arith.constant 0 : index
    %c0_94 = arith.constant 0 : index
    %91 = vector.load %arg2[%c12_92, %c0_93, %c0_94] : memref<32x64x16xf32, #tpu.memory_space<vmem>>, vector<1x64x16xf32>
    %92 = vector.shape_cast %91 : vector<1x64x16xf32> to vector<64x16xf32>
    %cst_95 = arith.constant dense<0.000000e+00> : vector<2x16xf32>
    %93 = tpu.matmul %90, %92, %cst_95 {dimension_numbers = #tpu.dot_dimension_numbers<[1], [0], [0], [1], [0, 0, 1, 1], [], []>} : vector<2x64xf32>, vector<64x16xf32>, vector<2x16xf32> -> vector<2x16xf32>
    %94 = arith.addf %88, %93 : vector<2x16xf32>
    %c0_96 = arith.constant 0 : index
    %c13 = arith.constant 13 : index
    %c0_97 = arith.constant 0 : index
    %95 = vector.load %arg4[%c0_96, %c13, %c0_97] : memref<2x32x64xf32, #tpu.memory_space<vmem>>, vector<2x1x64xf32>
    %96 = vector.shape_cast %95 : vector<2x1x64xf32> to vector<2x64xf32>
    %c13_98 = arith.constant 13 : index
    %c0_99 = arith.constant 0 : index
    %c0_100 = arith.constant 0 : index
    %97 = vector.load %arg2[%c13_98, %c0_99, %c0_100] : memref<32x64x16xf32, #tpu.memory_space<vmem>>, vector<1x64x16xf32>
    %98 = vector.shape_cast %97 : vector<1x64x16xf32> to vector<64x16xf32>
    %cst_101 = arith.constant dense<0.000000e+00> : vector<2x16xf32>
    %99 = tpu.matmul %96, %98, %cst_101 {dimension_numbers = #tpu.dot_dimension_numbers<[1], [0], [0], [1], [0, 0, 1, 1], [], []>} : vector<2x64xf32>, vector<64x16xf32>, vector<2x16xf32> -> vector<2x16xf32>
    %100 = arith.addf %94, %99 : vector<2x16xf32>
    %c0_102 = arith.constant 0 : index
    %c14 = arith.constant 14 : index
    %c0_103 = arith.constant 0 : index
    %101 = vector.load %arg4[%c0_102, %c14, %c0_103] : memref<2x32x64xf32, #tpu.memory_space<vmem>>, vector<2x1x64xf32>
    %102 = vector.shape_cast %101 : vector<2x1x64xf32> to vector<2x64xf32>
    %c14_104 = arith.constant 14 : index
    %c0_105 = arith.constant 0 : index
    %c0_106 = arith.constant 0 : index
    %103 = vector.load %arg2[%c14_104, %c0_105, %c0_106] : memref<32x64x16xf32, #tpu.memory_space<vmem>>, vector<1x64x16xf32>
    %104 = vector.shape_cast %103 : vector<1x64x16xf32> to vector<64x16xf32>
    %cst_107 = arith.constant dense<0.000000e+00> : vector<2x16xf32>
    %105 = tpu.matmul %102, %104, %cst_107 {dimension_numbers = #tpu.dot_dimension_numbers<[1], [0], [0], [1], [0, 0, 1, 1], [], []>} : vector<2x64xf32>, vector<64x16xf32>, vector<2x16xf32> -> vector<2x16xf32>
    %106 = arith.addf %100, %105 : vector<2x16xf32>
    %c0_108 = arith.constant 0 : index
    %c15 = arith.constant 15 : index
    %c0_109 = arith.constant 0 : index
    %107 = vector.load %arg4[%c0_108, %c15, %c0_109] : memref<2x32x64xf32, #tpu.memory_space<vmem>>, vector<2x1x64xf32>
    %108 = vector.shape_cast %107 : vector<2x1x64xf32> to vector<2x64xf32>
    %c15_110 = arith.constant 15 : index
    %c0_111 = arith.constant 0 : index
    %c0_112 = arith.constant 0 : index
    %109 = vector.load %arg2[%c15_110, %c0_111, %c0_112] : memref<32x64x16xf32, #tpu.memory_space<vmem>>, vector<1x64x16xf32>
    %110 = vector.shape_cast %109 : vector<1x64x16xf32> to vector<64x16xf32>
    %cst_113 = arith.constant dense<0.000000e+00> : vector<2x16xf32>
    %111 = tpu.matmul %108, %110, %cst_113 {dimension_numbers = #tpu.dot_dimension_numbers<[1], [0], [0], [1], [0, 0, 1, 1], [], []>} : vector<2x64xf32>, vector<64x16xf32>, vector<2x16xf32> -> vector<2x16xf32>
    %112 = arith.addf %106, %111 : vector<2x16xf32>
    %c0_114 = arith.constant 0 : index
    %c16 = arith.constant 16 : index
    %c0_115 = arith.constant 0 : index
    %113 = vector.load %arg4[%c0_114, %c16, %c0_115] : memref<2x32x64xf32, #tpu.memory_space<vmem>>, vector<2x1x64xf32>
    %114 = vector.shape_cast %113 : vector<2x1x64xf32> to vector<2x64xf32>
    %c16_116 = arith.constant 16 : index
    %c0_117 = arith.constant 0 : index
    %c0_118 = arith.constant 0 : index
    %115 = vector.load %arg2[%c16_116, %c0_117, %c0_118] : memref<32x64x16xf32, #tpu.memory_space<vmem>>, vector<1x64x16xf32>
    %116 = vector.shape_cast %115 : vector<1x64x16xf32> to vector<64x16xf32>
    %cst_119 = arith.constant dense<0.000000e+00> : vector<2x16xf32>
    %117 = tpu.matmul %114, %116, %cst_119 {dimension_numbers = #tpu.dot_dimension_numbers<[1], [0], [0], [1], [0, 0, 1, 1], [], []>} : vector<2x64xf32>, vector<64x16xf32>, vector<2x16xf32> -> vector<2x16xf32>
    %118 = arith.addf %112, %117 : vector<2x16xf32>
    %c0_120 = arith.constant 0 : index
    %c17 = arith.constant 17 : index
    %c0_121 = arith.constant 0 : index
    %119 = vector.load %arg4[%c0_120, %c17, %c0_121] : memref<2x32x64xf32, #tpu.memory_space<vmem>>, vector<2x1x64xf32>
    %120 = vector.shape_cast %119 : vector<2x1x64xf32> to vector<2x64xf32>
    %c17_122 = arith.constant 17 : index
    %c0_123 = arith.constant 0 : index
    %c0_124 = arith.constant 0 : index
    %121 = vector.load %arg2[%c17_122, %c0_123, %c0_124] : memref<32x64x16xf32, #tpu.memory_space<vmem>>, vector<1x64x16xf32>
    %122 = vector.shape_cast %121 : vector<1x64x16xf32> to vector<64x16xf32>
    %cst_125 = arith.constant dense<0.000000e+00> : vector<2x16xf32>
    %123 = tpu.matmul %120, %122, %cst_125 {dimension_numbers = #tpu.dot_dimension_numbers<[1], [0], [0], [1], [0, 0, 1, 1], [], []>} : vector<2x64xf32>, vector<64x16xf32>, vector<2x16xf32> -> vector<2x16xf32>
    %124 = arith.addf %118, %123 : vector<2x16xf32>
    %c0_126 = arith.constant 0 : index
    %c18 = arith.constant 18 : index
    %c0_127 = arith.constant 0 : index
    %125 = vector.load %arg4[%c0_126, %c18, %c0_127] : memref<2x32x64xf32, #tpu.memory_space<vmem>>, vector<2x1x64xf32>
    %126 = vector.shape_cast %125 : vector<2x1x64xf32> to vector<2x64xf32>
    %c18_128 = arith.constant 18 : index
    %c0_129 = arith.constant 0 : index
    %c0_130 = arith.constant 0 : index
    %127 = vector.load %arg2[%c18_128, %c0_129, %c0_130] : memref<32x64x16xf32, #tpu.memory_space<vmem>>, vector<1x64x16xf32>
    %128 = vector.shape_cast %127 : vector<1x64x16xf32> to vector<64x16xf32>
    %cst_131 = arith.constant dense<0.000000e+00> : vector<2x16xf32>
    %129 = tpu.matmul %126, %128, %cst_131 {dimension_numbers = #tpu.dot_dimension_numbers<[1], [0], [0], [1], [0, 0, 1, 1], [], []>} : vector<2x64xf32>, vector<64x16xf32>, vector<2x16xf32> -> vector<2x16xf32>
    %130 = arith.addf %124, %129 : vector<2x16xf32>
    %c0_132 = arith.constant 0 : index
    %c19 = arith.constant 19 : index
    %c0_133 = arith.constant 0 : index
    %131 = vector.load %arg4[%c0_132, %c19, %c0_133] : memref<2x32x64xf32, #tpu.memory_space<vmem>>, vector<2x1x64xf32>
    %132 = vector.shape_cast %131 : vector<2x1x64xf32> to vector<2x64xf32>
    %c19_134 = arith.constant 19 : index
    %c0_135 = arith.constant 0 : index
    %c0_136 = arith.constant 0 : index
    %133 = vector.load %arg2[%c19_134, %c0_135, %c0_136] : memref<32x64x16xf32, #tpu.memory_space<vmem>>, vector<1x64x16xf32>
    %134 = vector.shape_cast %133 : vector<1x64x16xf32> to vector<64x16xf32>
    %cst_137 = arith.constant dense<0.000000e+00> : vector<2x16xf32>
    %135 = tpu.matmul %132, %134, %cst_137 {dimension_numbers = #tpu.dot_dimension_numbers<[1], [0], [0], [1], [0, 0, 1, 1], [], []>} : vector<2x64xf32>, vector<64x16xf32>, vector<2x16xf32> -> vector<2x16xf32>
    %136 = arith.addf %130, %135 : vector<2x16xf32>
    %c0_138 = arith.constant 0 : index
    %c20 = arith.constant 20 : index
    %c0_139 = arith.constant 0 : index
    %137 = vector.load %arg4[%c0_138, %c20, %c0_139] : memref<2x32x64xf32, #tpu.memory_space<vmem>>, vector<2x1x64xf32>
    %138 = vector.shape_cast %137 : vector<2x1x64xf32> to vector<2x64xf32>
    %c20_140 = arith.constant 20 : index
    %c0_141 = arith.constant 0 : index
    %c0_142 = arith.constant 0 : index
    %139 = vector.load %arg2[%c20_140, %c0_141, %c0_142] : memref<32x64x16xf32, #tpu.memory_space<vmem>>, vector<1x64x16xf32>
    %140 = vector.shape_cast %139 : vector<1x64x16xf32> to vector<64x16xf32>
    %cst_143 = arith.constant dense<0.000000e+00> : vector<2x16xf32>
    %141 = tpu.matmul %138, %140, %cst_143 {dimension_numbers = #tpu.dot_dimension_numbers<[1], [0], [0], [1], [0, 0, 1, 1], [], []>} : vector<2x64xf32>, vector<64x16xf32>, vector<2x16xf32> -> vector<2x16xf32>
    %142 = arith.addf %136, %141 : vector<2x16xf32>
    %c0_144 = arith.constant 0 : index
    %c21 = arith.constant 21 : index
    %c0_145 = arith.constant 0 : index
    %143 = vector.load %arg4[%c0_144, %c21, %c0_145] : memref<2x32x64xf32, #tpu.memory_space<vmem>>, vector<2x1x64xf32>
    %144 = vector.shape_cast %143 : vector<2x1x64xf32> to vector<2x64xf32>
    %c21_146 = arith.constant 21 : index
    %c0_147 = arith.constant 0 : index
    %c0_148 = arith.constant 0 : index
    %145 = vector.load %arg2[%c21_146, %c0_147, %c0_148] : memref<32x64x16xf32, #tpu.memory_space<vmem>>, vector<1x64x16xf32>
    %146 = vector.shape_cast %145 : vector<1x64x16xf32> to vector<64x16xf32>
    %cst_149 = arith.constant dense<0.000000e+00> : vector<2x16xf32>
    %147 = tpu.matmul %144, %146, %cst_149 {dimension_numbers = #tpu.dot_dimension_numbers<[1], [0], [0], [1], [0, 0, 1, 1], [], []>} : vector<2x64xf32>, vector<64x16xf32>, vector<2x16xf32> -> vector<2x16xf32>
    %148 = arith.addf %142, %147 : vector<2x16xf32>
    %c0_150 = arith.constant 0 : index
    %c22 = arith.constant 22 : index
    %c0_151 = arith.constant 0 : index
    %149 = vector.load %arg4[%c0_150, %c22, %c0_151] : memref<2x32x64xf32, #tpu.memory_space<vmem>>, vector<2x1x64xf32>
    %150 = vector.shape_cast %149 : vector<2x1x64xf32> to vector<2x64xf32>
    %c22_152 = arith.constant 22 : index
    %c0_153 = arith.constant 0 : index
    %c0_154 = arith.constant 0 : index
    %151 = vector.load %arg2[%c22_152, %c0_153, %c0_154] : memref<32x64x16xf32, #tpu.memory_space<vmem>>, vector<1x64x16xf32>
    %152 = vector.shape_cast %151 : vector<1x64x16xf32> to vector<64x16xf32>
    %cst_155 = arith.constant dense<0.000000e+00> : vector<2x16xf32>
    %153 = tpu.matmul %150, %152, %cst_155 {dimension_numbers = #tpu.dot_dimension_numbers<[1], [0], [0], [1], [0, 0, 1, 1], [], []>} : vector<2x64xf32>, vector<64x16xf32>, vector<2x16xf32> -> vector<2x16xf32>
    %154 = arith.addf %148, %153 : vector<2x16xf32>
    %c0_156 = arith.constant 0 : index
    %c23 = arith.constant 23 : index
    %c0_157 = arith.constant 0 : index
    %155 = vector.load %arg4[%c0_156, %c23, %c0_157] : memref<2x32x64xf32, #tpu.memory_space<vmem>>, vector<2x1x64xf32>
    %156 = vector.shape_cast %155 : vector<2x1x64xf32> to vector<2x64xf32>
    %c23_158 = arith.constant 23 : index
    %c0_159 = arith.constant 0 : index
    %c0_160 = arith.constant 0 : index
    %157 = vector.load %arg2[%c23_158, %c0_159, %c0_160] : memref<32x64x16xf32, #tpu.memory_space<vmem>>, vector<1x64x16xf32>
    %158 = vector.shape_cast %157 : vector<1x64x16xf32> to vector<64x16xf32>
    %cst_161 = arith.constant dense<0.000000e+00> : vector<2x16xf32>
    %159 = tpu.matmul %156, %158, %cst_161 {dimension_numbers = #tpu.dot_dimension_numbers<[1], [0], [0], [1], [0, 0, 1, 1], [], []>} : vector<2x64xf32>, vector<64x16xf32>, vector<2x16xf32> -> vector<2x16xf32>
    %160 = arith.addf %154, %159 : vector<2x16xf32>
    %c0_162 = arith.constant 0 : index
    %c24 = arith.constant 24 : index
    %c0_163 = arith.constant 0 : index
    %161 = vector.load %arg4[%c0_162, %c24, %c0_163] : memref<2x32x64xf32, #tpu.memory_space<vmem>>, vector<2x1x64xf32>
    %162 = vector.shape_cast %161 : vector<2x1x64xf32> to vector<2x64xf32>
    %c24_164 = arith.constant 24 : index
    %c0_165 = arith.constant 0 : index
    %c0_166 = arith.constant 0 : index
    %163 = vector.load %arg2[%c24_164, %c0_165, %c0_166] : memref<32x64x16xf32, #tpu.memory_space<vmem>>, vector<1x64x16xf32>
    %164 = vector.shape_cast %163 : vector<1x64x16xf32> to vector<64x16xf32>
    %cst_167 = arith.constant dense<0.000000e+00> : vector<2x16xf32>
    %165 = tpu.matmul %162, %164, %cst_167 {dimension_numbers = #tpu.dot_dimension_numbers<[1], [0], [0], [1], [0, 0, 1, 1], [], []>} : vector<2x64xf32>, vector<64x16xf32>, vector<2x16xf32> -> vector<2x16xf32>
    %166 = arith.addf %160, %165 : vector<2x16xf32>
    %c0_168 = arith.constant 0 : index
    %c25 = arith.constant 25 : index
    %c0_169 = arith.constant 0 : index
    %167 = vector.load %arg4[%c0_168, %c25, %c0_169] : memref<2x32x64xf32, #tpu.memory_space<vmem>>, vector<2x1x64xf32>
    %168 = vector.shape_cast %167 : vector<2x1x64xf32> to vector<2x64xf32>
    %c25_170 = arith.constant 25 : index
    %c0_171 = arith.constant 0 : index
    %c0_172 = arith.constant 0 : index
    %169 = vector.load %arg2[%c25_170, %c0_171, %c0_172] : memref<32x64x16xf32, #tpu.memory_space<vmem>>, vector<1x64x16xf32>
    %170 = vector.shape_cast %169 : vector<1x64x16xf32> to vector<64x16xf32>
    %cst_173 = arith.constant dense<0.000000e+00> : vector<2x16xf32>
    %171 = tpu.matmul %168, %170, %cst_173 {dimension_numbers = #tpu.dot_dimension_numbers<[1], [0], [0], [1], [0, 0, 1, 1], [], []>} : vector<2x64xf32>, vector<64x16xf32>, vector<2x16xf32> -> vector<2x16xf32>
    %172 = arith.addf %166, %171 : vector<2x16xf32>
    %c0_174 = arith.constant 0 : index
    %c26 = arith.constant 26 : index
    %c0_175 = arith.constant 0 : index
    %173 = vector.load %arg4[%c0_174, %c26, %c0_175] : memref<2x32x64xf32, #tpu.memory_space<vmem>>, vector<2x1x64xf32>
    %174 = vector.shape_cast %173 : vector<2x1x64xf32> to vector<2x64xf32>
    %c26_176 = arith.constant 26 : index
    %c0_177 = arith.constant 0 : index
    %c0_178 = arith.constant 0 : index
    %175 = vector.load %arg2[%c26_176, %c0_177, %c0_178] : memref<32x64x16xf32, #tpu.memory_space<vmem>>, vector<1x64x16xf32>
    %176 = vector.shape_cast %175 : vector<1x64x16xf32> to vector<64x16xf32>
    %cst_179 = arith.constant dense<0.000000e+00> : vector<2x16xf32>
    %177 = tpu.matmul %174, %176, %cst_179 {dimension_numbers = #tpu.dot_dimension_numbers<[1], [0], [0], [1], [0, 0, 1, 1], [], []>} : vector<2x64xf32>, vector<64x16xf32>, vector<2x16xf32> -> vector<2x16xf32>
    %178 = arith.addf %172, %177 : vector<2x16xf32>
    %c0_180 = arith.constant 0 : index
    %c27 = arith.constant 27 : index
    %c0_181 = arith.constant 0 : index
    %179 = vector.load %arg4[%c0_180, %c27, %c0_181] : memref<2x32x64xf32, #tpu.memory_space<vmem>>, vector<2x1x64xf32>
    %180 = vector.shape_cast %179 : vector<2x1x64xf32> to vector<2x64xf32>
    %c27_182 = arith.constant 27 : index
    %c0_183 = arith.constant 0 : index
    %c0_184 = arith.constant 0 : index
    %181 = vector.load %arg2[%c27_182, %c0_183, %c0_184] : memref<32x64x16xf32, #tpu.memory_space<vmem>>, vector<1x64x16xf32>
    %182 = vector.shape_cast %181 : vector<1x64x16xf32> to vector<64x16xf32>
    %cst_185 = arith.constant dense<0.000000e+00> : vector<2x16xf32>
    %183 = tpu.matmul %180, %182, %cst_185 {dimension_numbers = #tpu.dot_dimension_numbers<[1], [0], [0], [1], [0, 0, 1, 1], [], []>} : vector<2x64xf32>, vector<64x16xf32>, vector<2x16xf32> -> vector<2x16xf32>
    %184 = arith.addf %178, %183 : vector<2x16xf32>
    %c0_186 = arith.constant 0 : index
    %c28 = arith.constant 28 : index
    %c0_187 = arith.constant 0 : index
    %185 = vector.load %arg4[%c0_186, %c28, %c0_187] : memref<2x32x64xf32, #tpu.memory_space<vmem>>, vector<2x1x64xf32>
    %186 = vector.shape_cast %185 : vector<2x1x64xf32> to vector<2x64xf32>
    %c28_188 = arith.constant 28 : index
    %c0_189 = arith.constant 0 : index
    %c0_190 = arith.constant 0 : index
    %187 = vector.load %arg2[%c28_188, %c0_189, %c0_190] : memref<32x64x16xf32, #tpu.memory_space<vmem>>, vector<1x64x16xf32>
    %188 = vector.shape_cast %187 : vector<1x64x16xf32> to vector<64x16xf32>
    %cst_191 = arith.constant dense<0.000000e+00> : vector<2x16xf32>
    %189 = tpu.matmul %186, %188, %cst_191 {dimension_numbers = #tpu.dot_dimension_numbers<[1], [0], [0], [1], [0, 0, 1, 1], [], []>} : vector<2x64xf32>, vector<64x16xf32>, vector<2x16xf32> -> vector<2x16xf32>
    %190 = arith.addf %184, %189 : vector<2x16xf32>
    %c0_192 = arith.constant 0 : index
    %c29 = arith.constant 29 : index
    %c0_193 = arith.constant 0 : index
    %191 = vector.load %arg4[%c0_192, %c29, %c0_193] : memref<2x32x64xf32, #tpu.memory_space<vmem>>, vector<2x1x64xf32>
    %192 = vector.shape_cast %191 : vector<2x1x64xf32> to vector<2x64xf32>
    %c29_194 = arith.constant 29 : index
    %c0_195 = arith.constant 0 : index
    %c0_196 = arith.constant 0 : index
    %193 = vector.load %arg2[%c29_194, %c0_195, %c0_196] : memref<32x64x16xf32, #tpu.memory_space<vmem>>, vector<1x64x16xf32>
    %194 = vector.shape_cast %193 : vector<1x64x16xf32> to vector<64x16xf32>
    %cst_197 = arith.constant dense<0.000000e+00> : vector<2x16xf32>
    %195 = tpu.matmul %192, %194, %cst_197 {dimension_numbers = #tpu.dot_dimension_numbers<[1], [0], [0], [1], [0, 0, 1, 1], [], []>} : vector<2x64xf32>, vector<64x16xf32>, vector<2x16xf32> -> vector<2x16xf32>
    %196 = arith.addf %190, %195 : vector<2x16xf32>
    %c0_198 = arith.constant 0 : index
    %c30 = arith.constant 30 : index
    %c0_199 = arith.constant 0 : index
    %197 = vector.load %arg4[%c0_198, %c30, %c0_199] : memref<2x32x64xf32, #tpu.memory_space<vmem>>, vector<2x1x64xf32>
    %198 = vector.shape_cast %197 : vector<2x1x64xf32> to vector<2x64xf32>
    %c30_200 = arith.constant 30 : index
    %c0_201 = arith.constant 0 : index
    %c0_202 = arith.constant 0 : index
    %199 = vector.load %arg2[%c30_200, %c0_201, %c0_202] : memref<32x64x16xf32, #tpu.memory_space<vmem>>, vector<1x64x16xf32>
    %200 = vector.shape_cast %199 : vector<1x64x16xf32> to vector<64x16xf32>
    %cst_203 = arith.constant dense<0.000000e+00> : vector<2x16xf32>
    %201 = tpu.matmul %198, %200, %cst_203 {dimension_numbers = #tpu.dot_dimension_numbers<[1], [0], [0], [1], [0, 0, 1, 1], [], []>} : vector<2x64xf32>, vector<64x16xf32>, vector<2x16xf32> -> vector<2x16xf32>
    %202 = arith.addf %196, %201 : vector<2x16xf32>
    %c0_204 = arith.constant 0 : index
    %c31 = arith.constant 31 : index
    %c0_205 = arith.constant 0 : index
    %203 = vector.load %arg4[%c0_204, %c31, %c0_205] : memref<2x32x64xf32, #tpu.memory_space<vmem>>, vector<2x1x64xf32>
    %204 = vector.shape_cast %203 : vector<2x1x64xf32> to vector<2x64xf32>
    %c31_206 = arith.constant 31 : index
    %c0_207 = arith.constant 0 : index
    %c0_208 = arith.constant 0 : index
    %205 = vector.load %arg2[%c31_206, %c0_207, %c0_208] : memref<32x64x16xf32, #tpu.memory_space<vmem>>, vector<1x64x16xf32>
    %206 = vector.shape_cast %205 : vector<1x64x16xf32> to vector<64x16xf32>
    %cst_209 = arith.constant dense<0.000000e+00> : vector<2x16xf32>
    %207 = tpu.matmul %204, %206, %cst_209 {dimension_numbers = #tpu.dot_dimension_numbers<[1], [0], [0], [1], [0, 0, 1, 1], [], []>} : vector<2x64xf32>, vector<64x16xf32>, vector<2x16xf32> -> vector<2x16xf32>
    %208 = arith.addf %202, %207 : vector<2x16xf32>
    %c0_210 = arith.constant 0 : index
    %c0_211 = arith.constant 0 : index
    %209 = vector.load %arg3[%c0_210, %c0_211] : memref<2x16xf32, #tpu.memory_space<vmem>>, vector<2x16xf32>
    tpu.vector_store %arg3[%c0_210, %c0_211], %208 {strides = array<i32>} : memref<2x16xf32, #tpu.memory_space<vmem>>, vector<2x16xf32>,
    return
  }
}

</mosaic_0001>

<bundles_post_ra>
// kernel: squeeze.17
= control target key start
LH: loop header
LB: loop body
LE: loop exit
PB: predicated region body
PF: predicated region fallthrough
CT: control target
= control target key end

     0   :  { %s7_s6 = smov 3  ;;  %s21_s9 = smov 3  ;;  %vm4_vm0 = vcmask 64512   ;;  %vm11_vm1 = vcmask 523712   ;;  %vm18_vm2 = vcmask 458112   ;;  %vm25_vm3 = vcmask 392512   ;;  %s119_s0 = inlined_call_operand.vmem [shape: f32[2,8,8], index: 0, kind: input, shape index: {}]   ;;  %s120_s1 = inlined_call_operand.vmem [shape: f32[2,1,64], index: 1, kind: output, shape index: {}]  }
   0x1   :  { %v61_v0 = vld [vmem:[%s119_s0 + $0x7] ss:$8 sm:%s7_s6]   ;;  %s75_s10 = smov 56   ;;  %v63_v1 = vld [vmem:[%s119_s0 + $0x5] ss:$8 sm:%s21_s9]   ;;  %s14_s13 = smov 3 }
   0x2   :  { %9 = vrot.lane.b32.xlu0 %v61_v0, %s75_s10  ;;  %s76_s14 = smov 40   ;;  %v62_v2 = vld [vmem:[%s119_s0 + $0x6] ss:$8 sm:%s14_s13]   ;;  %s28_s17 = smov 3  ;;  %vm32_vm4 = vcmask 326912   ;;  %vm39_vm5 = vcmask 261312  }
   0x3   :  { %23 = vrot.lane.b32.xlu1 %v63_v1, %s76_s14  ;;  %v64_v3 = vld [vmem:[%s119_s0 + $0x4] ss:$8 sm:%s28_s17]   ;;  %s35_s20 = smov 3  ;;  %s42_s21 = smov 3  ;;  %vm46_vm6 = vcmask 195712   ;;  %vm53_vm7 = vcmask 130112  }
   0x4   :  { %s77_s22 = smov 48   ;;  %s78_s23 = smov 32   ;;  %v65_v4 = vld [vmem:[%s119_s0 + $0x3] ss:$8 sm:%s35_s20]   ;;  %v66_v5 = vld [vmem:[%s119_s0 + $0x2] ss:$8 sm:%s42_s21]  }
   0x5   :  { %s2_s26 = smov 3  ;;  %s49_s29 = smov 3 }
   0x6   :  { %16 = vrot.lane.b32.xlu0 %v62_v2, %s77_s22  ;;  %v3_v6 = vld [vmem:[%s119_s0] ss:$8 sm:%s2_s26]   ;;  %s79_s3 = smov 24   ;;  %s80_s4 = smov 16  }
   0x7   :  { %30 = vrot.lane.b32.xlu1 %v64_v3, %s78_s23  ;;  %5 = vst.msk [vmem:[#allocation0] sm:$0x3] %vm4_vm0, %v3_v6   ;;  %v67_v7 = vld [vmem:[%s119_s0 + $0x1] ss:$8 sm:%s49_s29]   ;;  %s81_s0 = smov 8  }
   0xa   :  { %37 = vrot.lane.b32.xlu0 %v65_v4, %s79_s3 }
   0xb   :  { %44 = vrot.lane.b32.xlu1 %v66_v5, %s80_s4 }
   0xe   :  { %51 = vrot.lane.b32.xlu0 %v67_v7, %s81_s0 }
  0x74   :  { %v10_v8 = vpop.permute.xlu0 %9  }
  0x75   :  { %12 = vst.msk [vmem:[#allocation0] sm:$0x3] %vm11_vm1, %v10_v8   ;;  %v24_v9 = vpop.permute.xlu1 %23  }
  0x78   :  { %v17_v10 = vpop.permute.xlu0 %16  }
  0x79   :  { %19 = vst.msk [vmem:[#allocation0] sm:$0x3] %vm18_vm2, %v17_v10   ;;  %v31_v11 = vpop.permute.xlu1 %30  }
  0x7a   :  { %26 = vst.msk [vmem:[#allocation0] sm:$0x3] %vm25_vm3, %v24_v9  }
  0x7b   :  { %33 = vst.msk [vmem:[#allocation0] sm:$0x3] %vm32_vm4, %v31_v11  }
  0x7c   :  { %v38_v12 = vpop.permute.xlu0 %37  }
  0x7d   :  { %40 = vst.msk [vmem:[#allocation0] sm:$0x3] %vm39_vm5, %v38_v12   ;;  %v45_v13 = vpop.permute.xlu1 %44  }
  0x7e   :  { %47 = vst.msk [vmem:[#allocation0] sm:$0x3] %vm46_vm6, %v45_v13  }
  0x80   :  { %v52_v14 = vpop.permute.xlu0 %51  }
  0x81   :  { %54 = vst.msk [vmem:[#allocation0] sm:$0x3] %vm53_vm7, %v52_v14  }
  0x88   :  { %v58_v15 = vld [vmem:[#allocation0] sm:$0x3] }
  0x89   :  { %60 = vst [vmem:[%s120_s1] sm:$0x3] %v58_v15 }

// kernel: conv_exp_mm.1
= control target key start
LH: loop header
LB: loop body
LE: loop exit
PB: predicated region body
PF: predicated region fallthrough
CT: control target
= control target key end

     0   :  { %vm34_vm0 = vcmask 1041408   ;;  %vm4808_vm1 = vmmov 1   ;;  %vm21_vm3 = vcmask 80896   ;;  %s5909_s0 = inlined_call_operand.vmem [shape: f32[2,10,64], index: 0, kind: input, shape index: {}]   ;;  %s5910_s1 = inlined_call_operand.vmem [shape: f32[32,10], index: 1, kind: input, shape index: {}]   ;;  %s5911_s2 = inlined_call_operand.vmem [shape: f32[32,64,16], index: 2, kind: input, shape index: {}]   ;;  %s5912_s3 = inlined_call_operand.hbm [shape: f32[2,16], index: 3, kind: output, shape index: {}]  }
   0x1   :  { %v3091_v0 = vld [vmem:[%s5909_s0 + $0x10] sm:$0xff]  ;;  %v3092_v1 = vld [vmem:[%s5909_s0 + $0x18] sm:$0x3]  ;;  %v19_v2 = vld [vmem:[%s5909_s0] sm:$0xff] }
   0x2   :  { %vm4307_vm2 = vmpackc.low %vm34_vm0, %vm4808_vm1  ;;  %v4312_v3 = vpack.c.bf16 %v3092_v1, %v3091_v0  ;;  %v20_v4 = vld [vmem:[%s5909_s0 + $0x8] sm:$0x3]  ;;  %v136_v5 = vld [vmem:[%s5910_s1] sm:$0xff] }
   0x3   :  { %v4306_v6 = vpack.c.bf16 %v20_v4, %v19_v2  ;;  %3692 = vmatprep.mubr.msk.f32.mxu1 %vm21_vm3, %v136_v5  ;;  %3682 = vmatprep.mubr.msk.f32.mxu0 %vm21_vm3, %v136_v5 }
   0x4   :  { %4314 = vmatprep.subr.msk.bf16.mxu1 %vm4307_vm2, %v4312_v3 }
   0x5   :  { %8 = vsyncpa [#allocation4], 0  ;;  %4308 = vmatprep.subr.msk.bf16.mxu0 %vm4307_vm2, %v4306_v6  ;;  %4317 = vmatpush3.bf16.msk.msra.mxu1 %vm4307_vm2, %v4312_v3  ;;  %v137_v7 = vld [vmem:[%s5910_s1 + $0x8] sm:$0xff]  ;;  %v138_v8 = vld [vmem:[%s5910_s1 + $0x10] sm:$0xff]  ;;  %v4809_v13 = vmov 0.0|0.0   ;;  %vm4810_vm4 = vmmov 0  }
   0x6   :  { %4311 = vmatpush3.bf16.msk.msra.mxu0 %vm4307_vm2, %v4306_v6  ;;  %v139_v9 = vld [vmem:[%s5910_s1 + $0x18] sm:$0xff]  ;;  %v3098_v10 = vld [vmem:[%s5911_s2 + $0x40] sm:$0xff]  ;;  %v3099_v11 = vld [vmem:[%s5911_s2 + $0x48] sm:$0xff]  ;;  %4318 = vmatprep.subr.bf16.mxu1 %v4809_v13  ;;  %v4811_v32 = vmov 0.0   ;;  %vm131_vm5 = vcmask 523264   ;;  %vm280_vm6 = vcmask 1041409  }
   0x7   :  { %v4319_v12 = vpack.c.bf16 %v3099_v11, %v3098_v10  ;;  %4510 = vmatprep.subr.bf16.mxu0 %v4809_v13  ;;  %v3100_v14 = vld [vmem:[%s5911_s2 + $0x50] sm:$0xff]  ;;  %v3101_v15 = vld [vmem:[%s5911_s2 + $0x58] sm:$0xff]  ;;  %v3234_v16 = vld [vmem:[%s5911_s2 + $0x400] sm:$0xff]  ;;  %vm3070_vm7 = vcmask 123904  }
   0x8   :  { %3693 = vmatmul.mubr.msk.f32.vlgmr.msra.gmra.mrb[0].mxu1 %vm21_vm3, %v137_v7  ;;  %v4322_v17 = vpack.c.bf16 %v3101_v15, %v3100_v14  ;;  %v3235_v18 = vld [vmem:[%s5911_s2 + $0x408] sm:$0xff]  ;;  %v3102_v20 = vld [vmem:[%s5911_s2 + $0x60] sm:$0xff]  ;;  %v3236_v22 = vld [vmem:[%s5911_s2 + $0x410] sm:$0xff] }
   0x9   :  { %3683 = vmatmul.mubr.msk.f32.vlgmr.msra.gmra.mrb[0].mxu0 %vm21_vm3, %v137_v7  ;;  %3695 = vmatprep.mubr.msk.f32.mxu1 %vm21_vm3, %v138_v8  ;;  %v4511_v19 = vpack.c.bf16 %v3235_v18, %v3234_v16  ;;  %v3103_v21 = vld [vmem:[%s5911_s2 + $0x68] sm:$0xff]  ;;  %v3237_v24 = vld [vmem:[%s5911_s2 + $0x418] sm:$0xff]  ;;  %v3104_v26 = vld [vmem:[%s5911_s2 + $0x70] sm:$0xff] }
   0xa   :  { %3685 = vmatprep.mubr.msk.f32.mxu0 %vm21_vm3, %v138_v8  ;;  %4320 = vmatpush3.bf16.msra.mxu1 %v4319_v12  ;;  %v4325_v23 = vpack.c.bf16 %v3103_v21, %v3102_v20  ;;  %v4514_v25 = vpack.c.bf16 %v3237_v24, %v3236_v22  ;;  %v3105_v27 = vld [vmem:[%s5911_s2 + $0x78] sm:$0xff]  ;;  %v3238_v28 = vld [vmem:[%s5911_s2 + $0x420] sm:$0xff]  ;;  %v3239_v30 = vld [vmem:[%s5911_s2 + $0x428] sm:$0xff] }
   0xb   :  { %4321 = vmatprep.subr.bf16.mxu1 %v4809_v13  ;;  %4512 = vmatpush3.bf16.msra.mxu0 %v4511_v19  ;;  %v4328_v29 = vpack.c.bf16 %v3105_v27, %v3104_v26  ;;  %v4517_v31 = vpack.c.bf16 %v3239_v30, %v3238_v28  ;;  %v3240_v33 = vld [vmem:[%s5911_s2 + $0x430] sm:$0xff]  ;;  %v3241_v34 = vld [vmem:[%s5911_s2 + $0x438] sm:$0xff]  ;;  %v258_v60 = vld [vmem:[%s5911_s2] sm:$0xff] }
   0xc   :  { %3696 = vmatmul.mubr.msk.f32.gmra.mrb[2].mxu1 %vm21_vm3, %v139_v9  ;;  %4513 = vmatprep.subr.bf16.mxu0 %v4809_v13  ;;  %v4520_v35 = vpack.c.bf16 %v3241_v34, %v3240_v33  ;;  %v259_v61 = vld [vmem:[%s5911_s2 + $0x8] sm:$0xff]  ;;  %v260_v2 = vld [vmem:[%s5911_s2 + $0x10] sm:$0xff]  ;;  %v261_v3 = vld [vmem:[%s5911_s2 + $0x18] sm:$0xff] }
   0xd   :  { %3686 = vmatmul.mubr.msk.f32.gmra.mrb[2].mxu0 %vm21_vm3, %v139_v9  ;;  %3714 = vmatprep.mubr.msk.f32.mxu1 %vm4810_vm4, %v4811_v32  ;;  %v4331_v1 = vpack.c.bf16 %v259_v61, %v258_v60  ;;  %v3243_v4 = vld [vmem:[%s5911_s2 + $0x440] sm:$0xff]  ;;  %v3244_v5 = vld [vmem:[%s5911_s2 + $0x448] sm:$0xff]  ;;  %v4334_v8 = vpack.c.bf16 %v261_v3, %v260_v2  ;;  %v3245_v15 = vld [vmem:[%s5911_s2 + $0x450] sm:$0xff] }
   0xe   :  { %4323 = vmatpush3.bf16.msra.mxu1 %v4322_v17  ;;  %4018 = vmatprep.mubr.msk.f32.mxu0 %vm4810_vm4, %v4811_v32  ;;  %v4523_v11 = vpack.c.bf16 %v3244_v5, %v3243_v4  ;;  %v262_v12 = vld [vmem:[%s5911_s2 + $0x20] sm:$0xff]  ;;  %v263_v14 = vld [vmem:[%s5911_s2 + $0x28] sm:$0xff]  ;;  %v3246_v16 = vld [vmem:[%s5911_s2 + $0x458] sm:$0xff] }
   0xf   :  { %4324 = vmatprep.subr.bf16.mxu1 %v4809_v13  ;;  %4515 = vmatpush3.bf16.msra.mxu0 %v4514_v25  ;;  %v4337_v18 = vpack.c.bf16 %v263_v14, %v262_v12  ;;  %v4526_v19 = vpack.c.bf16 %v3246_v16, %v3245_v15  ;;  %v264_v20 = vld [vmem:[%s5911_s2 + $0x30] sm:$0xff]  ;;  %v265_v21 = vld [vmem:[%s5911_s2 + $0x38] sm:$0xff]  ;;  %v3247_v22 = vld [vmem:[%s5911_s2 + $0x460] sm:$0xff] }
  0x10   :  { %4516 = vmatprep.subr.bf16.mxu0 %v4809_v13  ;;  %v4340_v25 = vpack.c.bf16 %v265_v21, %v264_v20  ;;  %v3108_v27 = vld [vmem:[%s5911_s2 + $0x80] sm:$0xff]  ;;  %v3109_v28 = vld [vmem:[%s5911_s2 + $0x88] sm:$0xff]  ;;  %v3250_v30 = vld [vmem:[%s5911_s2 + $0x478] sm:$0xff] }
  0x11   :  { %v3117_v60 = vld [vmem:[%s5911_s2 + $0xc0] sm:$0xff]  ;;  %v3118_v61 = vld [vmem:[%s5911_s2 + $0xc8] sm:$0xff]  ;;  %v3119_v5 = vld [vmem:[%s5911_s2 + $0xd0] sm:$0xff] }
  0x12   :  { %4326 = vmatpush3.bf16.msra.mxu1 %v4325_v23  ;;  %v3248_v23 = vld [vmem:[%s5911_s2 + $0x468] sm:$0xff]  ;;  %v4355_v3 = vpack.c.bf16 %v3118_v61, %v3117_v60  ;;  %v3121_v15 = vld [vmem:[%s5911_s2 + $0xe0] sm:$0xff] }
  0x13   :  { %4327 = vmatprep.subr.bf16.mxu1 %v4809_v13  ;;  %4518 = vmatpush3.bf16.msra.mxu0 %v4517_v31  ;;  %v4529_v26 = vpack.c.bf16 %v3248_v23, %v3247_v22  ;;  %v3122_v16 = vld [vmem:[%s5911_s2 + $0xe8] sm:$0xff]  ;;  %v3123_v22 = vld [vmem:[%s5911_s2 + $0xf0] sm:$0xff]  ;;  %v3124_v23 = vld [vmem:[%s5911_s2 + $0xf8] sm:$0xff] }
  0x14   :  { %4519 = vmatprep.subr.bf16.mxu0 %v4809_v13  ;;  %v4361_v20 = vpack.c.bf16 %v3122_v16, %v3121_v15 }
  0x16   :  { %4329 = vmatpush3.bf16.msra.mxu1 %v4328_v29  ;;  %v3249_v29 = vld [vmem:[%s5911_s2 + $0x470] sm:$0xff] }
  0x17   :  { %4330 = vmatprep.subr.bf16.mxu1 %v4809_v13  ;;  %4521 = vmatpush3.bf16.msra.mxu0 %v4520_v35  ;;  %v4343_v35 = vpack.c.bf16 %v3109_v28, %v3108_v27  ;;  %v4364_v27 = vpack.c.bf16 %v3124_v23, %v3123_v22 }
  0x18   :  { %4522 = vmatprep.subr.bf16.mxu0 %v4809_v13 }
  0xdb   :  { %v3694_v36 = vpop.f32.mrb[0].mxu1 }
  0xdc   :  { %v245_v37 = vmul.f32 1.442695, %v3694_v36  ;;  %v3684_v38 = vpop.f32.mrb[0].mxu0  ;;  %v224_v39 = vpop.f32.mrb[1].mxu1  ;;  %v4532_v36 = vpack.c.bf16 %v3250_v30, %v3249_v29  ;;  %v3126_v29 = vld [vmem:[%s5911_s2 + $0x100] sm:$0xff]  ;;  %v3127_v30 = vld [vmem:[%s5911_s2 + $0x108] sm:$0xff] }
  0xdd   :  { %v125_v40 = vmul.f32 1.442695, %v3684_v38  ;;  %v243_v41 = vmul.f32 1.442695, %v224_v39  ;;  %v104_v42 = vpop.f32.mrb[1].mxu0  ;;  %v3111_v38 = vld [vmem:[%s5911_s2 + $0x98] sm:$0xff] }
  0xde   :  { %4768 = vpow2.f32 %v245_v37  ;;  %v123_v43 = vmul.f32 1.442695, %v104_v42  ;;  %v3110_v37 = vld [vmem:[%s5911_s2 + $0x90] sm:$0xff]  ;;  %v3252_v39 = vld [vmem:[%s5911_s2 + $0x480] sm:$0xff] }
  0xdf   :  { %4770 = vpow2.f32 %v125_v40  ;;  %v3697_v44 = vpop.f32.mrb[2].mxu1  ;;  %v3253_v40 = vld [vmem:[%s5911_s2 + $0x488] sm:$0xff] }
  0xe0   :  { %4772 = vpow2.f32 %v243_v41  ;;  %v249_v45 = vmul.f32 1.442695, %v3697_v44  ;;  %v3687_v46 = vpop.f32.mrb[2].mxu0  ;;  %v234_v47 = vpop.f32.mrb[3].mxu1  ;;  %v4346_v44 = vpack.c.bf16 %v3111_v38, %v3110_v37  ;;  %v4367_v37 = vpack.c.bf16 %v3127_v30, %v3126_v29 }
  0xe1   :  { %4774 = vpow2.f32 %v123_v43  ;;  %v129_v48 = vmul.f32 1.442695, %v3687_v46  ;;  %v247_v49 = vmul.f32 1.442695, %v234_v47  ;;  %v114_v50 = vpop.f32.mrb[3].mxu0  ;;  %v3112_v46 = vld [vmem:[%s5911_s2 + $0xa0] sm:$0xff] }
  0xe2   :  { %4776 = vpow2.f32 %v249_v45  ;;  %v127_v51 = vmul.f32 1.442695, %v114_v50  ;;  %v4535_v45 = vpack.c.bf16 %v3253_v40, %v3252_v39  ;;  %v3113_v47 = vld [vmem:[%s5911_s2 + $0xa8] sm:$0xff]  ;;  %v3128_v39 = vld [vmem:[%s5911_s2 + $0x110] sm:$0xff]  ;;  %v3129_v40 = vld [vmem:[%s5911_s2 + $0x118] sm:$0xff] }
  0xe3   :  { %4778 = vpow2.f32 %v129_v48  ;;  %v3254_v48 = vld [vmem:[%s5911_s2 + $0x490] sm:$0xff] }
  0xe4   :  { %4780 = vpow2.f32 %v247_v49  ;;  %v3255_v49 = vld [vmem:[%s5911_s2 + $0x498] sm:$0xff] }
  0xe5   :  { %4782 = vpow2.f32 %v127_v51  ;;  %v4349_v51 = vpack.c.bf16 %v3113_v47, %v3112_v46  ;;  %v4370_v46 = vpack.c.bf16 %v3129_v40, %v3128_v39 }
  0xe8   :  { %v4769_v52 = vpop.eup %4768 }
  0xe9   :  { %v4771_v53 = vpop.eup %4770  ;;  %253 = vst.msk [vmem:[#allocation2 + $0x28] sm:$0xff] %vm131_vm5, %v4769_v52  ;;  %v4538_v52 = vpack.c.bf16 %v3255_v49, %v3254_v48  ;;  %v3130_v48 = vld [vmem:[%s5911_s2 + $0x120] sm:$0xff]  ;;  %v3131_v49 = vld [vmem:[%s5911_s2 + $0x128] sm:$0xff] }
  0xea   :  { %v4773_v54 = vpop.eup %4772  ;;  %133 = vst.msk [vmem:[#allocation2 + $0x8] sm:$0xff] %vm131_vm5, %v4771_v53  ;;  %v3114_v53 = vld [vmem:[%s5911_s2 + $0xb0] sm:$0xff] }
  0xeb   :  { %v4775_v55 = vpop.eup %4774  ;;  %252 = vst.msk [vmem:[#allocation2 + $0x20] sm:$0xff] %vm131_vm5, %v4773_v54  ;;  %v3115_v54 = vld [vmem:[%s5911_s2 + $0xb8] sm:$0xff] }
  0xec   :  { %v4777_v56 = vpop.eup %4776  ;;  %132 = vst.msk [vmem:[#allocation2] sm:$0xff] %vm131_vm5, %v4775_v55  ;;  %v3256_v55 = vld [vmem:[%s5911_s2 + $0x4a0] sm:$0xff] }
  0xed   :  { %v4779_v57 = vpop.eup %4778  ;;  %255 = vst.msk [vmem:[#allocation2 + $0x38] sm:$0xff] %vm131_vm5, %v4777_v56  ;;  %v3257_v56 = vld [vmem:[%s5911_s2 + $0x4a8] sm:$0xff] }
  0xee   :  { %v4781_v58 = vpop.eup %4780  ;;  %135 = vst.msk [vmem:[#allocation2 + $0x18] sm:$0xff] %vm131_vm5, %v4779_v57 }
  0xef   :  { %v4783_v59 = vpop.eup %4782  ;;  %254 = vst.msk [vmem:[#allocation2 + $0x30] sm:$0xff] %vm131_vm5, %v4781_v58  ;;  %v4352_v58 = vpack.c.bf16 %v3115_v54, %v3114_v53  ;;  %v4373_v53 = vpack.c.bf16 %v3131_v49, %v3130_v48 }
  0xf0   :  { %134 = vst.msk [vmem:[#allocation2 + $0x10] sm:$0xff] %vm131_vm5, %v4783_v59  ;;  %v4541_v59 = vpack.c.bf16 %v3257_v56, %v3256_v55  ;;  %v3132_v55 = vld [vmem:[%s5911_s2 + $0x130] sm:$0xff]  ;;  %v3133_v56 = vld [vmem:[%s5911_s2 + $0x138] sm:$0xff] }
  0xf1   :  { %v4376_v60 = vpack.c.bf16 %v3133_v56, %v3132_v55 }
  0xf2   :  { %v267_v62 = vld [vmem:[#allocation2 + $0x21] sm:$0x1]  ;;  %v257_v24 = vld [vmem:[#allocation2 + $0x20] sm:$0x1]  ;;  %v431_v57 = vld [vmem:[#allocation2 + $0x22] sm:$0x1] }
  0xf3   :  { %v266_v63 = vld [vmem:[#allocation2 + $0x1] sm:$0x1]  ;;  %v279_v0 = vrot.slane %v267_v62, 7  ;;  %v356_v31 = vrot.slane %v257_v24, 7  ;;  %v256_v33 = vld [vmem:[#allocation2] sm:$0x1] }
  0xf4   :  { %v3258_v62 = vld [vmem:[%s5911_s2 + $0x4b0] sm:$0xff]  ;;  %v3265_v24 = vld [vmem:[%s5911_s2 + $0x4e0] sm:$0xff] }
  0xf5   :  { %v281_v6 = vsel %vm280_vm6, %v279_v0, %v266_v63  ;;  %v357_v41 = vsel %vm280_vm6, %v356_v31, %v256_v33  ;;  %v3259_v63 = vld [vmem:[%s5911_s2 + $0x4b8] sm:$0xff]  ;;  %v443_v0 = vrot.slane %v431_v57, 7  ;;  %v3267_v31 = vld [vmem:[%s5911_s2 + $0x4f0] sm:$0xff]  ;;  %v3274_v57 = vld [vmem:[%s5911_s2 + $0x520] sm:$0xff] }
  0xf6   :  { %3715 = vmatmul.mubr.msk.f32.vlgmr.msra.gmra.mrb[4].mxu1 %vm131_vm5, %v281_v6  ;;  %v1663_v7 = vld [vmem:[#allocation2 + $0x30] sm:$0x1]  ;;  %v1751_v34 = vld [vmem:[#allocation2 + $0x31] sm:$0x1]  ;;  %v1839_v2 = vld [vmem:[#allocation2 + $0x32] sm:$0x1]  ;;  %v4544_v4 = vpack.c.bf16 %v3259_v63, %v3258_v62 }
  0xf7   :  { %4332 = vmatpush3.bf16.msra.mxu1 %v4331_v1  ;;  %v1662_v9 = vld [vmem:[#allocation2 + $0x10] sm:$0x1]  ;;  %v1675_v10 = vrot.slane %v1663_v7, 7  ;;  %3733 = vmatprep.mubr.msk.f32.mxu1 %vm4810_vm4, %v4811_v32  ;;  %v1763_v42 = vrot.slane %v1751_v34, 7  ;;  %v1750_v43 = vld [vmem:[#allocation2 + $0x11] sm:$0x1] }
  0xf8   :  { %4333 = vmatprep.subr.bf16.mxu1 %v4809_v13  ;;  %v430_v1 = vld [vmem:[#allocation2 + $0x2] sm:$0x1]  ;;  %v3120_v6 = vld [vmem:[%s5911_s2 + $0xd8] sm:$0xff]  ;;  %v3136_v63 = vld [vmem:[%s5911_s2 + $0x148] sm:$0xff] }
  0xf9   :  { %v1676_v17 = vsel %vm280_vm6, %v1675_v10, %v1662_v9  ;;  %v1764_v50 = vsel %vm280_vm6, %v1763_v42, %v1750_v43  ;;  %v3261_v7 = vld [vmem:[%s5911_s2 + $0x4c0] sm:$0xff]  ;;  %v444_v9 = vsel %vm280_vm6, %v443_v0, %v430_v1  ;;  %v1851_v10 = vrot.slane %v1839_v2, 7  ;;  %v3268_v33 = vld [vmem:[%s5911_s2 + $0x4f8] sm:$0xff]  ;;  %v3271_v42 = vld [vmem:[%s5911_s2 + $0x508] sm:$0xff] }
  0xfa   :  { %4019 = vmatmul.mubr.msk.f32.vlgmr.msra.gmra.mrb[4].mxu0 %vm131_vm5, %v1676_v17  ;;  %v4358_v12 = vpack.c.bf16 %v3120_v6, %v3119_v5  ;;  %v3263_v17 = vld [vmem:[%s5911_s2 + $0x4d0] sm:$0xff]  ;;  %v4556_v38 = vpack.c.bf16 %v3268_v33, %v3267_v31  ;;  %v3135_v62 = vld [vmem:[%s5911_s2 + $0x140] sm:$0xff]  ;;  %v3277_v1 = vld [vmem:[%s5911_s2 + $0x538] sm:$0xff] }
  0xfb   :  { %4335 = vmatpush3.bf16.msra.mxu1 %v4334_v8  ;;  %4524 = vmatpush3.bf16.msra.mxu0 %v4523_v11  ;;  %v3262_v8 = vld [vmem:[%s5911_s2 + $0x4c8] sm:$0xff]  ;;  %v1838_v11 = vld [vmem:[#allocation2 + $0x12] sm:$0x1]  ;;  %v4379_v5 = vpack.c.bf16 %v3136_v63, %v3135_v62  ;;  %v3144_v31 = vld [vmem:[%s5911_s2 + $0x180] sm:$0xff] }
  0xfc   :  { %4336 = vmatprep.subr.bf16.mxu1 %v4809_v13  ;;  %4525 = vmatprep.subr.bf16.mxu0 %v4809_v13  ;;  %v4547_v14 = vpack.c.bf16 %v3262_v8, %v3261_v7  ;;  %v3276_v0 = vld [vmem:[%s5911_s2 + $0x530] sm:$0xff]  ;;  %v3138_v8 = vld [vmem:[%s5911_s2 + $0x158] sm:$0xff]  ;;  %v3145_v33 = vld [vmem:[%s5911_s2 + $0x188] sm:$0xff] }
  0xfd   :  { %4037 = vmatprep.mubr.msk.f32.mxu0 %vm4810_vm4, %v4811_v32  ;;  %v4568_v6 = vpack.c.bf16 %v3277_v1, %v3276_v0  ;;  %v3137_v7 = vld [vmem:[%s5911_s2 + $0x150] sm:$0xff]  ;;  %v4391_v39 = vpack.c.bf16 %v3145_v33, %v3144_v31  ;;  %v3153_v0 = vld [vmem:[%s5911_s2 + $0x1c0] sm:$0xff]  ;;  %v3154_v1 = vld [vmem:[%s5911_s2 + $0x1c8] sm:$0xff] }
  0xfe   :  { %v4382_v15 = vpack.c.bf16 %v3138_v8, %v3137_v7  ;;  %v4403_v7 = vpack.c.bf16 %v3154_v1, %v3153_v0 }
  0xff   :  { %4338 = vmatpush3.bf16.msra.mxu1 %v4337_v18  ;;  %4527 = vmatpush3.bf16.msra.mxu0 %v4526_v19  ;;  %v3264_v18 = vld [vmem:[%s5911_s2 + $0x4d8] sm:$0xff]  ;;  %v1852_v19 = vsel %vm280_vm6, %v1851_v10, %v1838_v11  ;;  %v3280_v10 = vld [vmem:[%s5911_s2 + $0x548] sm:$0xff] }
 0x100   :  { %4339 = vmatprep.subr.bf16.mxu1 %v4809_v13  ;;  %4528 = vmatprep.subr.bf16.mxu0 %v4809_v13  ;;  %v4550_v21 = vpack.c.bf16 %v3264_v18, %v3263_v17  ;;  %v3139_v17 = vld [vmem:[%s5911_s2 + $0x160] sm:$0xff]  ;;  %v3140_v18 = vld [vmem:[%s5911_s2 + $0x168] sm:$0xff] }
 0x101   :  { %v4385_v22 = vpack.c.bf16 %v3140_v18, %v3139_v17 }
 0x103   :  { %4341 = vmatpush3.bf16.msra.mxu1 %v4340_v25  ;;  %4530 = vmatpush3.bf16.msra.mxu0 %v4529_v26  ;;  %v3266_v25 = vld [vmem:[%s5911_s2 + $0x4e8] sm:$0xff]  ;;  %v519_v26 = vld [vmem:[#allocation2 + $0x23] sm:$0x1] }
 0x104   :  { %4342 = vmatprep.subr.bf16.mxu1 %v4809_v13  ;;  %4531 = vmatprep.subr.bf16.mxu0 %v4809_v13  ;;  %v4553_v28 = vpack.c.bf16 %v3266_v25, %v3265_v24  ;;  %v531_v34 = vrot.slane %v519_v26, 7  ;;  %v3141_v24 = vld [vmem:[%s5911_s2 + $0x170] sm:$0xff]  ;;  %v3142_v25 = vld [vmem:[%s5911_s2 + $0x178] sm:$0xff]  ;;  %v3283_v26 = vld [vmem:[%s5911_s2 + $0x560] sm:$0xff] }
 0x105   :  { %v4388_v29 = vpack.c.bf16 %v3142_v25, %v3141_v24 }
 0x106   :  { %3734 = vmatmul.mubr.msk.f32.vlgmr.msra.gmra.mrb[4].mxu1 %vm131_vm5, %v357_v41  ;;  %v3270_v41 = vld [vmem:[%s5911_s2 + $0x500] sm:$0xff] }
 0x107   :  { %4344 = vmatpush3.bf16.msra.mxu1 %v4343_v35  ;;  %4533 = vmatpush3.bf16.msra.mxu0 %v4532_v36  ;;  %v518_v35 = vld [vmem:[#allocation2 + $0x3] sm:$0x1]  ;;  %v1927_v36 = vld [vmem:[#allocation2 + $0x33] sm:$0x1]  ;;  %v4559_v47 = vpack.c.bf16 %v3271_v42, %v3270_v41  ;;  %v3147_v42 = vld [vmem:[%s5911_s2 + $0x198] sm:$0xff] }
 0x108   :  { %4345 = vmatprep.subr.bf16.mxu1 %v4809_v13  ;;  %4534 = vmatprep.subr.bf16.mxu0 %v4809_v13  ;;  %v532_v43 = vsel %vm280_vm6, %v531_v34, %v518_v35  ;;  %v3285_v34 = vld [vmem:[%s5911_s2 + $0x570] sm:$0xff]  ;;  %v3286_v35 = vld [vmem:[%s5911_s2 + $0x578] sm:$0xff] }
 0x109   :  { %3752 = vmatprep.mubr.msk.f32.mxu1 %vm4810_vm4, %v4811_v32  ;;  %v4580_v40 = vpack.c.bf16 %v3286_v35, %v3285_v34  ;;  %v3146_v41 = vld [vmem:[%s5911_s2 + $0x190] sm:$0xff]  ;;  %v3162_v34 = vld [vmem:[%s5911_s2 + $0x200] sm:$0xff]  ;;  %v3163_v35 = vld [vmem:[%s5911_s2 + $0x208] sm:$0xff] }
 0x10a   :  { %4038 = vmatmul.mubr.msk.f32.vlgmr.msra.gmra.mrb[4].mxu0 %vm131_vm5, %v1764_v50  ;;  %v3272_v50 = vld [vmem:[%s5911_s2 + $0x510] sm:$0xff]  ;;  %v4394_v48 = vpack.c.bf16 %v3147_v42, %v3146_v41  ;;  %v4415_v41 = vpack.c.bf16 %v3163_v35, %v3162_v34 }
 0x10b   :  { %4347 = vmatpush3.bf16.msra.mxu1 %v4346_v44  ;;  %4536 = vmatpush3.bf16.msra.mxu0 %v4535_v45  ;;  %v1939_v44 = vrot.slane %v1927_v36, 7  ;;  %v1926_v45 = vld [vmem:[#allocation2 + $0x13] sm:$0x1] }
 0x10c   :  { %4348 = vmatprep.subr.bf16.mxu1 %v4809_v13  ;;  %4537 = vmatprep.subr.bf16.mxu0 %v4809_v13 }
 0x10d   :  { %4056 = vmatprep.mubr.msk.f32.mxu0 %vm4810_vm4, %v4811_v32 }
 0x10f   :  { %4350 = vmatpush3.bf16.msra.mxu1 %v4349_v51  ;;  %4539 = vmatpush3.bf16.msra.mxu0 %v4538_v52  ;;  %v3273_v51 = vld [vmem:[%s5911_s2 + $0x518] sm:$0xff]  ;;  %v1940_v52 = vsel %vm280_vm6, %v1939_v44, %v1926_v45  ;;  %v3289_v44 = vld [vmem:[%s5911_s2 + $0x588] sm:$0xff] }
 0x110   :  { %4351 = vmatprep.subr.bf16.mxu1 %v4809_v13  ;;  %4540 = vmatprep.subr.bf16.mxu0 %v4809_v13  ;;  %v4562_v54 = vpack.c.bf16 %v3273_v51, %v3272_v50  ;;  %v3148_v50 = vld [vmem:[%s5911_s2 + $0x1a0] sm:$0xff]  ;;  %v3149_v51 = vld [vmem:[%s5911_s2 + $0x1a8] sm:$0xff] }
 0x111   :  { %v4397_v55 = vpack.c.bf16 %v3149_v51, %v3148_v50 }
 0x113   :  { %4353 = vmatpush3.bf16.msra.mxu1 %v4352_v58  ;;  %4542 = vmatpush3.bf16.msra.mxu0 %v4541_v59  ;;  %v3275_v58 = vld [vmem:[%s5911_s2 + $0x528] sm:$0xff]  ;;  %v607_v59 = vld [vmem:[#allocation2 + $0x24] sm:$0x1] }
 0x114   :  { %4354 = vmatprep.subr.bf16.mxu1 %v4809_v13  ;;  %4543 = vmatprep.subr.bf16.mxu0 %v4809_v13  ;;  %v4565_v61 = vpack.c.bf16 %v3275_v58, %v3274_v57  ;;  %v619_v2 = vrot.slane %v607_v59, 7  ;;  %v3150_v57 = vld [vmem:[%s5911_s2 + $0x1b0] sm:$0xff]  ;;  %v3151_v58 = vld [vmem:[%s5911_s2 + $0x1b8] sm:$0xff]  ;;  %v3292_v59 = vld [vmem:[%s5911_s2 + $0x5a0] sm:$0xff] }
 0x115   :  { %v4400_v62 = vpack.c.bf16 %v3151_v58, %v3150_v57 }
 0x116   :  { %3753 = vmatmul.mubr.msk.f32.vlgmr.msra.gmra.mrb[4].mxu1 %vm131_vm5, %v444_v9  ;;  %v3279_v9 = vld [vmem:[%s5911_s2 + $0x540] sm:$0xff] }
 0x117   :  { %4356 = vmatpush3.bf16.msra.mxu1 %v4355_v3  ;;  %4545 = vmatpush3.bf16.msra.mxu0 %v4544_v4  ;;  %v606_v3 = vld [vmem:[#allocation2 + $0x4] sm:$0x1]  ;;  %v2015_v4 = vld [vmem:[#allocation2 + $0x34] sm:$0x1]  ;;  %v4571_v16 = vpack.c.bf16 %v3280_v10, %v3279_v9  ;;  %v3156_v10 = vld [vmem:[%s5911_s2 + $0x1d8] sm:$0xff] }
 0x118   :  { %4357 = vmatprep.subr.bf16.mxu1 %v4809_v13  ;;  %4546 = vmatprep.subr.bf16.mxu0 %v4809_v13  ;;  %v620_v11 = vsel %vm280_vm6, %v619_v2, %v606_v3  ;;  %v3294_v2 = vld [vmem:[%s5911_s2 + $0x5b0] sm:$0xff]  ;;  %v3295_v3 = vld [vmem:[%s5911_s2 + $0x5b8] sm:$0xff] }
 0x119   :  { %3771 = vmatprep.mubr.msk.f32.mxu1 %vm4810_vm4, %v4811_v32  ;;  %v4592_v8 = vpack.c.bf16 %v3295_v3, %v3294_v2  ;;  %v3155_v9 = vld [vmem:[%s5911_s2 + $0x1d0] sm:$0xff]  ;;  %v3171_v2 = vld [vmem:[%s5911_s2 + $0x240] sm:$0xff]  ;;  %v3172_v3 = vld [vmem:[%s5911_s2 + $0x248] sm:$0xff] }
 0x11a   :  { %4057 = vmatmul.mubr.msk.f32.vlgmr.msra.gmra.mrb[4].mxu0 %vm131_vm5, %v1852_v19  ;;  %v3281_v19 = vld [vmem:[%s5911_s2 + $0x550] sm:$0xff]  ;;  %v4406_v17 = vpack.c.bf16 %v3156_v10, %v3155_v9  ;;  %v4427_v9 = vpack.c.bf16 %v3172_v3, %v3171_v2 }
 0x11b   :  { %4359 = vmatpush3.bf16.msra.mxu1 %v4358_v12  ;;  %4548 = vmatpush3.bf16.msra.mxu0 %v4547_v14  ;;  %v2027_v12 = vrot.slane %v2015_v4, 7  ;;  %v2014_v14 = vld [vmem:[#allocation2 + $0x14] sm:$0x1] }
 0x11c   :  { %4360 = vmatprep.subr.bf16.mxu1 %v4809_v13  ;;  %4549 = vmatprep.subr.bf16.mxu0 %v4809_v13 }
 0x11d   :  { %4075 = vmatprep.mubr.msk.f32.mxu0 %vm4810_vm4, %v4811_v32 }
 0x11f   :  { %4362 = vmatpush3.bf16.msra.mxu1 %v4361_v20  ;;  %4551 = vmatpush3.bf16.msra.mxu0 %v4550_v21  ;;  %v3282_v20 = vld [vmem:[%s5911_s2 + $0x558] sm:$0xff]  ;;  %v2028_v21 = vsel %vm280_vm6, %v2027_v12, %v2014_v14  ;;  %v3298_v12 = vld [vmem:[%s5911_s2 + $0x5c8] sm:$0xff] }
 0x120   :  { %4363 = vmatprep.subr.bf16.mxu1 %v4809_v13  ;;  %4552 = vmatprep.subr.bf16.mxu0 %v4809_v13  ;;  %v4574_v23 = vpack.c.bf16 %v3282_v20, %v3281_v19  ;;  %v3157_v19 = vld [vmem:[%s5911_s2 + $0x1e0] sm:$0xff]  ;;  %v3158_v20 = vld [vmem:[%s5911_s2 + $0x1e8] sm:$0xff] }
 0x121   :  { %v4409_v24 = vpack.c.bf16 %v3158_v20, %v3157_v19 }
 0x123   :  { %4365 = vmatpush3.bf16.msra.mxu1 %v4364_v27  ;;  %4554 = vmatpush3.bf16.msra.mxu0 %v4553_v28  ;;  %v3284_v27 = vld [vmem:[%s5911_s2 + $0x568] sm:$0xff]  ;;  %v695_v28 = vld [vmem:[#allocation2 + $0x25] sm:$0x1] }
 0x124   :  { %4366 = vmatprep.subr.bf16.mxu1 %v4809_v13  ;;  %4555 = vmatprep.subr.bf16.mxu0 %v4809_v13  ;;  %v4577_v30 = vpack.c.bf16 %v3284_v27, %v3283_v26  ;;  %v707_v36 = vrot.slane %v695_v28, 7  ;;  %v3159_v26 = vld [vmem:[%s5911_s2 + $0x1f0] sm:$0xff]  ;;  %v3160_v27 = vld [vmem:[%s5911_s2 + $0x1f8] sm:$0xff]  ;;  %v3301_v28 = vld [vmem:[%s5911_s2 + $0x5e0] sm:$0xff] }
 0x125   :  { %v4412_v31 = vpack.c.bf16 %v3160_v27, %v3159_v26 }
 0x126   :  { %3772 = vmatmul.mubr.msk.f32.vlgmr.msra.gmra.mrb[4].mxu1 %vm131_vm5, %v532_v43  ;;  %v3288_v43 = vld [vmem:[%s5911_s2 + $0x580] sm:$0xff] }
 0x127   :  { %4368 = vmatpush3.bf16.msra.mxu1 %v4367_v37  ;;  %4557 = vmatpush3.bf16.msra.mxu0 %v4556_v38  ;;  %v694_v37 = vld [vmem:[#allocation2 + $0x5] sm:$0x1]  ;;  %v2103_v38 = vld [vmem:[#allocation2 + $0x35] sm:$0x1]  ;;  %v4583_v49 = vpack.c.bf16 %v3289_v44, %v3288_v43  ;;  %v3165_v44 = vld [vmem:[%s5911_s2 + $0x218] sm:$0xff] }
 0x128   :  { %4369 = vmatprep.subr.bf16.mxu1 %v4809_v13  ;;  %4558 = vmatprep.subr.bf16.mxu0 %v4809_v13  ;;  %v708_v45 = vsel %vm280_vm6, %v707_v36, %v694_v37  ;;  %v3303_v36 = vld [vmem:[%s5911_s2 + $0x5f0] sm:$0xff]  ;;  %v3304_v37 = vld [vmem:[%s5911_s2 + $0x5f8] sm:$0xff] }
 0x129   :  { %3790 = vmatprep.mubr.msk.f32.mxu1 %vm4810_vm4, %v4811_v32  ;;  %v4604_v42 = vpack.c.bf16 %v3304_v37, %v3303_v36  ;;  %v3164_v43 = vld [vmem:[%s5911_s2 + $0x210] sm:$0xff]  ;;  %v3180_v36 = vld [vmem:[%s5911_s2 + $0x280] sm:$0xff]  ;;  %v3181_v37 = vld [vmem:[%s5911_s2 + $0x288] sm:$0xff] }
 0x12a   :  { %4076 = vmatmul.mubr.msk.f32.vlgmr.msra.gmra.mrb[4].mxu0 %vm131_vm5, %v1940_v52  ;;  %v3290_v52 = vld [vmem:[%s5911_s2 + $0x590] sm:$0xff]  ;;  %v4418_v50 = vpack.c.bf16 %v3165_v44, %v3164_v43  ;;  %v4439_v43 = vpack.c.bf16 %v3181_v37, %v3180_v36 }
 0x12b   :  { %4371 = vmatpush3.bf16.msra.mxu1 %v4370_v46  ;;  %4560 = vmatpush3.bf16.msra.mxu0 %v4559_v47  ;;  %v2115_v46 = vrot.slane %v2103_v38, 7  ;;  %v2102_v47 = vld [vmem:[#allocation2 + $0x15] sm:$0x1] }
 0x12c   :  { %4372 = vmatprep.subr.bf16.mxu1 %v4809_v13  ;;  %4561 = vmatprep.subr.bf16.mxu0 %v4809_v13 }
 0x12d   :  { %4094 = vmatprep.mubr.msk.f32.mxu0 %vm4810_vm4, %v4811_v32 }
 0x12f   :  { %4374 = vmatpush3.bf16.msra.mxu1 %v4373_v53  ;;  %4563 = vmatpush3.bf16.msra.mxu0 %v4562_v54  ;;  %v3291_v53 = vld [vmem:[%s5911_s2 + $0x598] sm:$0xff]  ;;  %v2116_v54 = vsel %vm280_vm6, %v2115_v46, %v2102_v47  ;;  %v3307_v46 = vld [vmem:[%s5911_s2 + $0x608] sm:$0xff] }
 0x130   :  { %4375 = vmatprep.subr.bf16.mxu1 %v4809_v13  ;;  %4564 = vmatprep.subr.bf16.mxu0 %v4809_v13  ;;  %v4586_v56 = vpack.c.bf16 %v3291_v53, %v3290_v52  ;;  %v3166_v52 = vld [vmem:[%s5911_s2 + $0x220] sm:$0xff]  ;;  %v3167_v53 = vld [vmem:[%s5911_s2 + $0x228] sm:$0xff] }
 0x131   :  { %v4421_v57 = vpack.c.bf16 %v3167_v53, %v3166_v52 }
 0x133   :  { %4377 = vmatpush3.bf16.msra.mxu1 %v4376_v60  ;;  %4566 = vmatpush3.bf16.msra.mxu0 %v4565_v61  ;;  %v3293_v60 = vld [vmem:[%s5911_s2 + $0x5a8] sm:$0xff]  ;;  %v783_v61 = vld [vmem:[#allocation2 + $0x26] sm:$0x1] }
 0x134   :  { %4378 = vmatprep.subr.bf16.mxu1 %v4809_v13  ;;  %4567 = vmatprep.subr.bf16.mxu0 %v4809_v13  ;;  %v4589_v63 = vpack.c.bf16 %v3293_v60, %v3292_v59  ;;  %v795_v4 = vrot.slane %v783_v61, 7  ;;  %v3168_v59 = vld [vmem:[%s5911_s2 + $0x230] sm:$0xff]  ;;  %v3169_v60 = vld [vmem:[%s5911_s2 + $0x238] sm:$0xff]  ;;  %v3310_v61 = vld [vmem:[%s5911_s2 + $0x620] sm:$0xff] }
 0x135   :  { %v4424_v0 = vpack.c.bf16 %v3169_v60, %v3168_v59 }
 0x136   :  { %3791 = vmatmul.mubr.msk.f32.vlgmr.msra.gmra.mrb[4].mxu1 %vm131_vm5, %v620_v11  ;;  %v3297_v11 = vld [vmem:[%s5911_s2 + $0x5c0] sm:$0xff] }
 0x137   :  { %4380 = vmatpush3.bf16.msra.mxu1 %v4379_v5  ;;  %4569 = vmatpush3.bf16.msra.mxu0 %v4568_v6  ;;  %v782_v5 = vld [vmem:[#allocation2 + $0x6] sm:$0x1]  ;;  %v2191_v6 = vld [vmem:[#allocation2 + $0x36] sm:$0x1]  ;;  %v4595_v18 = vpack.c.bf16 %v3298_v12, %v3297_v11  ;;  %v3174_v12 = vld [vmem:[%s5911_s2 + $0x258] sm:$0xff] }
 0x138   :  { %4381 = vmatprep.subr.bf16.mxu1 %v4809_v13  ;;  %4570 = vmatprep.subr.bf16.mxu0 %v4809_v13  ;;  %v796_v14 = vsel %vm280_vm6, %v795_v4, %v782_v5  ;;  %v3312_v4 = vld [vmem:[%s5911_s2 + $0x630] sm:$0xff]  ;;  %v3313_v5 = vld [vmem:[%s5911_s2 + $0x638] sm:$0xff] }
 0x139   :  { %3809 = vmatprep.mubr.msk.f32.mxu1 %vm4810_vm4, %v4811_v32  ;;  %v4616_v10 = vpack.c.bf16 %v3313_v5, %v3312_v4  ;;  %v3173_v11 = vld [vmem:[%s5911_s2 + $0x250] sm:$0xff]  ;;  %v3189_v4 = vld [vmem:[%s5911_s2 + $0x2c0] sm:$0xff]  ;;  %v3190_v5 = vld [vmem:[%s5911_s2 + $0x2c8] sm:$0xff] }
 0x13a   :  { %4095 = vmatmul.mubr.msk.f32.vlgmr.msra.gmra.mrb[4].mxu0 %vm131_vm5, %v2028_v21  ;;  %v3299_v21 = vld [vmem:[%s5911_s2 + $0x5d0] sm:$0xff]  ;;  %v4430_v19 = vpack.c.bf16 %v3174_v12, %v3173_v11  ;;  %v4451_v11 = vpack.c.bf16 %v3190_v5, %v3189_v4 }
 0x13b   :  { %4383 = vmatpush3.bf16.msra.mxu1 %v4382_v15  ;;  %4572 = vmatpush3.bf16.msra.mxu0 %v4571_v16  ;;  %v2203_v15 = vrot.slane %v2191_v6, 7  ;;  %v2190_v16 = vld [vmem:[#allocation2 + $0x16] sm:$0x1] }
 0x13c   :  { %4384 = vmatprep.subr.bf16.mxu1 %v4809_v13  ;;  %4573 = vmatprep.subr.bf16.mxu0 %v4809_v13 }
 0x13d   :  { %4113 = vmatprep.mubr.msk.f32.mxu0 %vm4810_vm4, %v4811_v32 }
 0x13f   :  { %4386 = vmatpush3.bf16.msra.mxu1 %v4385_v22  ;;  %4575 = vmatpush3.bf16.msra.mxu0 %v4574_v23  ;;  %v3300_v22 = vld [vmem:[%s5911_s2 + $0x5d8] sm:$0xff]  ;;  %v2204_v23 = vsel %vm280_vm6, %v2203_v15, %v2190_v16  ;;  %v3316_v15 = vld [vmem:[%s5911_s2 + $0x648] sm:$0xff] }
 0x140   :  { %4387 = vmatprep.subr.bf16.mxu1 %v4809_v13  ;;  %4576 = vmatprep.subr.bf16.mxu0 %v4809_v13  ;;  %v4598_v25 = vpack.c.bf16 %v3300_v22, %v3299_v21  ;;  %v3175_v21 = vld [vmem:[%s5911_s2 + $0x260] sm:$0xff]  ;;  %v3176_v22 = vld [vmem:[%s5911_s2 + $0x268] sm:$0xff] }
 0x141   :  { %v4433_v26 = vpack.c.bf16 %v3176_v22, %v3175_v21 }
 0x143   :  { %4389 = vmatpush3.bf16.msra.mxu1 %v4388_v29  ;;  %4578 = vmatpush3.bf16.msra.mxu0 %v4577_v30  ;;  %v3302_v29 = vld [vmem:[%s5911_s2 + $0x5e8] sm:$0xff]  ;;  %v871_v30 = vld [vmem:[#allocation2 + $0x27] sm:$0x1] }
 0x144   :  { %4390 = vmatprep.subr.bf16.mxu1 %v4809_v13  ;;  %4579 = vmatprep.subr.bf16.mxu0 %v4809_v13  ;;  %v4601_v33 = vpack.c.bf16 %v3302_v29, %v3301_v28  ;;  %v883_v38 = vrot.slane %v871_v30, 7  ;;  %v3177_v28 = vld [vmem:[%s5911_s2 + $0x270] sm:$0xff]  ;;  %v3178_v29 = vld [vmem:[%s5911_s2 + $0x278] sm:$0xff]  ;;  %v3319_v30 = vld [vmem:[%s5911_s2 + $0x660] sm:$0xff] }
 0x145   :  { %v4436_v34 = vpack.c.bf16 %v3178_v29, %v3177_v28 }
 0x146   :  { %3810 = vmatmul.mubr.msk.f32.vlgmr.msra.gmra.mrb[4].mxu1 %vm131_vm5, %v708_v45  ;;  %v3306_v45 = vld [vmem:[%s5911_s2 + $0x600] sm:$0xff] }
 0x147   :  { %4392 = vmatpush3.bf16.msra.mxu1 %v4391_v39  ;;  %4581 = vmatpush3.bf16.msra.mxu0 %v4580_v40  ;;  %v870_v39 = vld [vmem:[#allocation2 + $0x7] sm:$0x1]  ;;  %v2279_v40 = vld [vmem:[#allocation2 + $0x37] sm:$0x1]  ;;  %v4607_v51 = vpack.c.bf16 %v3307_v46, %v3306_v45  ;;  %v3183_v46 = vld [vmem:[%s5911_s2 + $0x298] sm:$0xff] }
 0x148   :  { %4393 = vmatprep.subr.bf16.mxu1 %v4809_v13  ;;  %4582 = vmatprep.subr.bf16.mxu0 %v4809_v13  ;;  %v884_v47 = vsel %vm280_vm6, %v883_v38, %v870_v39  ;;  %v3321_v38 = vld [vmem:[%s5911_s2 + $0x670] sm:$0xff]  ;;  %v3322_v39 = vld [vmem:[%s5911_s2 + $0x678] sm:$0xff] }
 0x149   :  { %3828 = vmatprep.mubr.msk.f32.mxu1 %vm4810_vm4, %v4811_v32  ;;  %v4628_v44 = vpack.c.bf16 %v3322_v39, %v3321_v38  ;;  %v3182_v45 = vld [vmem:[%s5911_s2 + $0x290] sm:$0xff]  ;;  %v3198_v38 = vld [vmem:[%s5911_s2 + $0x300] sm:$0xff]  ;;  %v3199_v39 = vld [vmem:[%s5911_s2 + $0x308] sm:$0xff] }
 0x14a   :  { %4114 = vmatmul.mubr.msk.f32.vlgmr.msra.gmra.mrb[4].mxu0 %vm131_vm5, %v2116_v54  ;;  %v3308_v54 = vld [vmem:[%s5911_s2 + $0x610] sm:$0xff]  ;;  %v4442_v52 = vpack.c.bf16 %v3183_v46, %v3182_v45  ;;  %v4463_v45 = vpack.c.bf16 %v3199_v39, %v3198_v38 }
 0x14b   :  { %4395 = vmatpush3.bf16.msra.mxu1 %v4394_v48  ;;  %4584 = vmatpush3.bf16.msra.mxu0 %v4583_v49  ;;  %v2291_v48 = vrot.slane %v2279_v40, 7  ;;  %v2278_v49 = vld [vmem:[#allocation2 + $0x17] sm:$0x1] }
 0x14c   :  { %4396 = vmatprep.subr.bf16.mxu1 %v4809_v13  ;;  %4585 = vmatprep.subr.bf16.mxu0 %v4809_v13 }
 0x14d   :  { %4132 = vmatprep.mubr.msk.f32.mxu0 %vm4810_vm4, %v4811_v32 }
 0x14f   :  { %4398 = vmatpush3.bf16.msra.mxu1 %v4397_v55  ;;  %4587 = vmatpush3.bf16.msra.mxu0 %v4586_v56  ;;  %v3309_v55 = vld [vmem:[%s5911_s2 + $0x618] sm:$0xff]  ;;  %v2292_v56 = vsel %vm280_vm6, %v2291_v48, %v2278_v49  ;;  %v3325_v48 = vld [vmem:[%s5911_s2 + $0x688] sm:$0xff] }
 0x150   :  { %4399 = vmatprep.subr.bf16.mxu1 %v4809_v13  ;;  %4588 = vmatprep.subr.bf16.mxu0 %v4809_v13  ;;  %v4610_v58 = vpack.c.bf16 %v3309_v55, %v3308_v54  ;;  %v3184_v54 = vld [vmem:[%s5911_s2 + $0x2a0] sm:$0xff]  ;;  %v3185_v55 = vld [vmem:[%s5911_s2 + $0x2a8] sm:$0xff] }
 0x151   :  { %v4445_v59 = vpack.c.bf16 %v3185_v55, %v3184_v54 }
 0x153   :  { %4401 = vmatpush3.bf16.msra.mxu1 %v4400_v62  ;;  %4590 = vmatpush3.bf16.msra.mxu0 %v4589_v63  ;;  %v3311_v62 = vld [vmem:[%s5911_s2 + $0x628] sm:$0xff] }
 0x154   :  { %4402 = vmatprep.subr.bf16.mxu1 %v4809_v13  ;;  %4591 = vmatprep.subr.bf16.mxu0 %v4809_v13  ;;  %v959_v63 = vld [vmem:[#allocation2 + $0x28] sm:$0x1]  ;;  %v4613_v1 = vpack.c.bf16 %v3311_v62, %v3310_v61  ;;  %v3186_v61 = vld [vmem:[%s5911_s2 + $0x2b0] sm:$0xff]  ;;  %v3187_v62 = vld [vmem:[%s5911_s2 + $0x2b8] sm:$0xff] }
 0x155   :  { %v971_v6 = vrot.slane %v959_v63, 7  ;;  %v3328_v63 = vld [vmem:[%s5911_s2 + $0x6a0] sm:$0xff]  ;;  %v4448_v2 = vpack.c.bf16 %v3187_v62, %v3186_v61 }
 0x156   :  { %3829 = vmatmul.mubr.msk.f32.vlgmr.msra.gmra.mrb[4].mxu1 %vm131_vm5, %v796_v14  ;;  %v3315_v14 = vld [vmem:[%s5911_s2 + $0x640] sm:$0xff] }
 0x157   :  { %4404 = vmatpush3.bf16.msra.mxu1 %v4403_v7  ;;  %4593 = vmatpush3.bf16.msra.mxu0 %v4592_v8  ;;  %v958_v7 = vld [vmem:[#allocation2 + $0x8] sm:$0x1]  ;;  %v2367_v8 = vld [vmem:[#allocation2 + $0x38] sm:$0x1]  ;;  %v4619_v20 = vpack.c.bf16 %v3316_v15, %v3315_v14  ;;  %v3191_v14 = vld [vmem:[%s5911_s2 + $0x2d0] sm:$0xff] }
 0x158   :  { %4405 = vmatprep.subr.bf16.mxu1 %v4809_v13  ;;  %4594 = vmatprep.subr.bf16.mxu0 %v4809_v13  ;;  %v972_v16 = vsel %vm280_vm6, %v971_v6, %v958_v7  ;;  %v3330_v6 = vld [vmem:[%s5911_s2 + $0x6b0] sm:$0xff]  ;;  %v3331_v7 = vld [vmem:[%s5911_s2 + $0x6b8] sm:$0xff] }
 0x159   :  { %3847 = vmatprep.mubr.msk.f32.mxu1 %vm4810_vm4, %v4811_v32  ;;  %v4640_v12 = vpack.c.bf16 %v3331_v7, %v3330_v6  ;;  %v3192_v15 = vld [vmem:[%s5911_s2 + $0x2d8] sm:$0xff]  ;;  %v3207_v6 = vld [vmem:[%s5911_s2 + $0x340] sm:$0xff]  ;;  %v3208_v7 = vld [vmem:[%s5911_s2 + $0x348] sm:$0xff] }
 0x15a   :  { %4133 = vmatmul.mubr.msk.f32.vlgmr.msra.gmra.mrb[4].mxu0 %vm131_vm5, %v2204_v23  ;;  %v3317_v23 = vld [vmem:[%s5911_s2 + $0x650] sm:$0xff]  ;;  %v4454_v21 = vpack.c.bf16 %v3192_v15, %v3191_v14  ;;  %v4475_v14 = vpack.c.bf16 %v3208_v7, %v3207_v6 }
 0x15b   :  { %4407 = vmatpush3.bf16.msra.mxu1 %v4406_v17  ;;  %4596 = vmatpush3.bf16.msra.mxu0 %v4595_v18  ;;  %v2379_v17 = vrot.slane %v2367_v8, 7  ;;  %v2366_v18 = vld [vmem:[#allocation2 + $0x18] sm:$0x1] }
 0x15c   :  { %4408 = vmatprep.subr.bf16.mxu1 %v4809_v13  ;;  %4597 = vmatprep.subr.bf16.mxu0 %v4809_v13 }
 0x15d   :  { %4151 = vmatprep.mubr.msk.f32.mxu0 %vm4810_vm4, %v4811_v32 }
 0x15f   :  { %4410 = vmatpush3.bf16.msra.mxu1 %v4409_v24  ;;  %4599 = vmatpush3.bf16.msra.mxu0 %v4598_v25  ;;  %v3318_v24 = vld [vmem:[%s5911_s2 + $0x658] sm:$0xff]  ;;  %v2380_v25 = vsel %vm280_vm6, %v2379_v17, %v2366_v18  ;;  %v3334_v17 = vld [vmem:[%s5911_s2 + $0x6c8] sm:$0xff] }
 0x160   :  { %4411 = vmatprep.subr.bf16.mxu1 %v4809_v13  ;;  %4600 = vmatprep.subr.bf16.mxu0 %v4809_v13  ;;  %v4622_v27 = vpack.c.bf16 %v3318_v24, %v3317_v23  ;;  %v3193_v23 = vld [vmem:[%s5911_s2 + $0x2e0] sm:$0xff]  ;;  %v3194_v24 = vld [vmem:[%s5911_s2 + $0x2e8] sm:$0xff] }
 0x161   :  { %v4457_v28 = vpack.c.bf16 %v3194_v24, %v3193_v23 }
 0x163   :  { %4413 = vmatpush3.bf16.msra.mxu1 %v4412_v31  ;;  %4602 = vmatpush3.bf16.msra.mxu0 %v4601_v33  ;;  %v3320_v31 = vld [vmem:[%s5911_s2 + $0x668] sm:$0xff] }
 0x164   :  { %4414 = vmatprep.subr.bf16.mxu1 %v4809_v13  ;;  %4603 = vmatprep.subr.bf16.mxu0 %v4809_v13  ;;  %v1047_v33 = vld [vmem:[#allocation2 + $0x29] sm:$0x1]  ;;  %v4625_v35 = vpack.c.bf16 %v3320_v31, %v3319_v30  ;;  %v3195_v30 = vld [vmem:[%s5911_s2 + $0x2f0] sm:$0xff]  ;;  %v3196_v31 = vld [vmem:[%s5911_s2 + $0x2f8] sm:$0xff] }
 0x165   :  { %v1059_v40 = vrot.slane %v1047_v33, 7  ;;  %v3337_v33 = vld [vmem:[%s5911_s2 + $0x6e0] sm:$0xff]  ;;  %v4460_v36 = vpack.c.bf16 %v3196_v31, %v3195_v30 }
 0x166   :  { %3848 = vmatmul.mubr.msk.f32.vlgmr.msra.gmra.mrb[4].mxu1 %vm131_vm5, %v884_v47  ;;  %v3324_v47 = vld [vmem:[%s5911_s2 + $0x680] sm:$0xff] }
 0x167   :  { %4416 = vmatpush3.bf16.msra.mxu1 %v4415_v41  ;;  %4605 = vmatpush3.bf16.msra.mxu0 %v4604_v42  ;;  %v1046_v41 = vld [vmem:[#allocation2 + $0x9] sm:$0x1]  ;;  %v2455_v42 = vld [vmem:[#allocation2 + $0x39] sm:$0x1]  ;;  %v4631_v53 = vpack.c.bf16 %v3325_v48, %v3324_v47  ;;  %v3200_v47 = vld [vmem:[%s5911_s2 + $0x310] sm:$0xff] }
 0x168   :  { %4417 = vmatprep.subr.bf16.mxu1 %v4809_v13  ;;  %4606 = vmatprep.subr.bf16.mxu0 %v4809_v13  ;;  %v1060_v49 = vsel %vm280_vm6, %v1059_v40, %v1046_v41  ;;  %v3339_v40 = vld [vmem:[%s5911_s2 + $0x6f0] sm:$0xff]  ;;  %v3340_v41 = vld [vmem:[%s5911_s2 + $0x6f8] sm:$0xff] }
 0x169   :  { %3866 = vmatprep.mubr.msk.f32.mxu1 %vm4810_vm4, %v4811_v32  ;;  %v4652_v46 = vpack.c.bf16 %v3340_v41, %v3339_v40  ;;  %v3201_v48 = vld [vmem:[%s5911_s2 + $0x318] sm:$0xff]  ;;  %v3216_v40 = vld [vmem:[%s5911_s2 + $0x380] sm:$0xff]  ;;  %v3217_v41 = vld [vmem:[%s5911_s2 + $0x388] sm:$0xff] }
 0x16a   :  { %4152 = vmatmul.mubr.msk.f32.vlgmr.msra.gmra.mrb[4].mxu0 %vm131_vm5, %v2292_v56  ;;  %v3326_v56 = vld [vmem:[%s5911_s2 + $0x690] sm:$0xff]  ;;  %v4466_v54 = vpack.c.bf16 %v3201_v48, %v3200_v47  ;;  %v4487_v47 = vpack.c.bf16 %v3217_v41, %v3216_v40 }
 0x16b   :  { %4419 = vmatpush3.bf16.msra.mxu1 %v4418_v50  ;;  %4608 = vmatpush3.bf16.msra.mxu0 %v4607_v51  ;;  %v2467_v50 = vrot.slane %v2455_v42, 7  ;;  %v2454_v51 = vld [vmem:[#allocation2 + $0x19] sm:$0x1] }
 0x16c   :  { %4420 = vmatprep.subr.bf16.mxu1 %v4809_v13  ;;  %4609 = vmatprep.subr.bf16.mxu0 %v4809_v13 }
 0x16d   :  { %4170 = vmatprep.mubr.msk.f32.mxu0 %vm4810_vm4, %v4811_v32 }
 0x16f   :  { %4422 = vmatpush3.bf16.msra.mxu1 %v4421_v57  ;;  %4611 = vmatpush3.bf16.msra.mxu0 %v4610_v58  ;;  %v3327_v57 = vld [vmem:[%s5911_s2 + $0x698] sm:$0xff]  ;;  %v2468_v58 = vsel %vm280_vm6, %v2467_v50, %v2454_v51  ;;  %v3343_v50 = vld [vmem:[%s5911_s2 + $0x708] sm:$0xff] }
 0x170   :  { %4423 = vmatprep.subr.bf16.mxu1 %v4809_v13  ;;  %4612 = vmatprep.subr.bf16.mxu0 %v4809_v13  ;;  %v4634_v60 = vpack.c.bf16 %v3327_v57, %v3326_v56  ;;  %v3202_v56 = vld [vmem:[%s5911_s2 + $0x320] sm:$0xff]  ;;  %v3203_v57 = vld [vmem:[%s5911_s2 + $0x328] sm:$0xff] }
 0x171   :  { %v4469_v61 = vpack.c.bf16 %v3203_v57, %v3202_v56 }
 0x173   :  { %4425 = vmatpush3.bf16.msra.mxu1 %v4424_v0  ;;  %4614 = vmatpush3.bf16.msra.mxu0 %v4613_v1  ;;  %v3329_v0 = vld [vmem:[%s5911_s2 + $0x6a8] sm:$0xff] }
 0x174   :  { %4426 = vmatprep.subr.bf16.mxu1 %v4809_v13  ;;  %4615 = vmatprep.subr.bf16.mxu0 %v4809_v13  ;;  %v1135_v1 = vld [vmem:[#allocation2 + $0x2a] sm:$0x1]  ;;  %v4637_v3 = vpack.c.bf16 %v3329_v0, %v3328_v63  ;;  %v3204_v63 = vld [vmem:[%s5911_s2 + $0x330] sm:$0xff]  ;;  %v3205_v0 = vld [vmem:[%s5911_s2 + $0x338] sm:$0xff] }
 0x175   :  { %v1147_v8 = vrot.slane %v1135_v1, 7  ;;  %v3346_v1 = vld [vmem:[%s5911_s2 + $0x720] sm:$0xff]  ;;  %v4472_v4 = vpack.c.bf16 %v3205_v0, %v3204_v63 }
 0x176   :  { %3867 = vmatmul.mubr.msk.f32.vlgmr.msra.gmra.mrb[4].mxu1 %vm131_vm5, %v972_v16  ;;  %v3333_v16 = vld [vmem:[%s5911_s2 + $0x6c0] sm:$0xff] }
 0x177   :  { %4428 = vmatpush3.bf16.msra.mxu1 %v4427_v9  ;;  %4617 = vmatpush3.bf16.msra.mxu0 %v4616_v10  ;;  %v1134_v9 = vld [vmem:[#allocation2 + $0xa] sm:$0x1]  ;;  %v2543_v10 = vld [vmem:[#allocation2 + $0x3a] sm:$0x1]  ;;  %v4643_v22 = vpack.c.bf16 %v3334_v17, %v3333_v16  ;;  %v3209_v16 = vld [vmem:[%s5911_s2 + $0x350] sm:$0xff] }
 0x178   :  { %4429 = vmatprep.subr.bf16.mxu1 %v4809_v13  ;;  %4618 = vmatprep.subr.bf16.mxu0 %v4809_v13  ;;  %v1148_v18 = vsel %vm280_vm6, %v1147_v8, %v1134_v9  ;;  %v3348_v8 = vld [vmem:[%s5911_s2 + $0x730] sm:$0xff]  ;;  %v3349_v9 = vld [vmem:[%s5911_s2 + $0x738] sm:$0xff] }
 0x179   :  { %3885 = vmatprep.mubr.msk.f32.mxu1 %vm4810_vm4, %v4811_v32  ;;  %v4664_v15 = vpack.c.bf16 %v3349_v9, %v3348_v8  ;;  %v3210_v17 = vld [vmem:[%s5911_s2 + $0x358] sm:$0xff]  ;;  %v3225_v8 = vld [vmem:[%s5911_s2 + $0x3c0] sm:$0xff]  ;;  %v3226_v9 = vld [vmem:[%s5911_s2 + $0x3c8] sm:$0xff] }
 0x17a   :  { %4171 = vmatmul.mubr.msk.f32.vlgmr.msra.gmra.mrb[4].mxu0 %vm131_vm5, %v2380_v25  ;;  %v3335_v25 = vld [vmem:[%s5911_s2 + $0x6d0] sm:$0xff]  ;;  %v4478_v23 = vpack.c.bf16 %v3210_v17, %v3209_v16  ;;  %v4499_v16 = vpack.c.bf16 %v3226_v9, %v3225_v8 }
 0x17b   :  { %4431 = vmatpush3.bf16.msra.mxu1 %v4430_v19  ;;  %4620 = vmatpush3.bf16.msra.mxu0 %v4619_v20  ;;  %v2555_v19 = vrot.slane %v2543_v10, 7  ;;  %v2542_v20 = vld [vmem:[#allocation2 + $0x1a] sm:$0x1] }
 0x17c   :  { %4432 = vmatprep.subr.bf16.mxu1 %v4809_v13  ;;  %4621 = vmatprep.subr.bf16.mxu0 %v4809_v13 }
 0x17d   :  { %4189 = vmatprep.mubr.msk.f32.mxu0 %vm4810_vm4, %v4811_v32 }
 0x17f   :  { %4434 = vmatpush3.bf16.msra.mxu1 %v4433_v26  ;;  %4623 = vmatpush3.bf16.msra.mxu0 %v4622_v27  ;;  %v3336_v26 = vld [vmem:[%s5911_s2 + $0x6d8] sm:$0xff]  ;;  %v2556_v27 = vsel %vm280_vm6, %v2555_v19, %v2542_v20  ;;  %v3352_v19 = vld [vmem:[%s5911_s2 + $0x748] sm:$0xff] }
 0x180   :  { %4435 = vmatprep.subr.bf16.mxu1 %v4809_v13  ;;  %4624 = vmatprep.subr.bf16.mxu0 %v4809_v13  ;;  %v4646_v29 = vpack.c.bf16 %v3336_v26, %v3335_v25  ;;  %v3211_v25 = vld [vmem:[%s5911_s2 + $0x360] sm:$0xff]  ;;  %v3212_v26 = vld [vmem:[%s5911_s2 + $0x368] sm:$0xff] }
 0x181   :  { %v4481_v30 = vpack.c.bf16 %v3212_v26, %v3211_v25 }
 0x183   :  { %4437 = vmatpush3.bf16.msra.mxu1 %v4436_v34  ;;  %4626 = vmatpush3.bf16.msra.mxu0 %v4625_v35  ;;  %v3338_v34 = vld [vmem:[%s5911_s2 + $0x6e8] sm:$0xff] }
 0x184   :  { %4438 = vmatprep.subr.bf16.mxu1 %v4809_v13  ;;  %4627 = vmatprep.subr.bf16.mxu0 %v4809_v13  ;;  %v1223_v35 = vld [vmem:[#allocation2 + $0x2b] sm:$0x1]  ;;  %v4649_v37 = vpack.c.bf16 %v3338_v34, %v3337_v33  ;;  %v3213_v33 = vld [vmem:[%s5911_s2 + $0x370] sm:$0xff]  ;;  %v3214_v34 = vld [vmem:[%s5911_s2 + $0x378] sm:$0xff] }
 0x185   :  { %v1235_v42 = vrot.slane %v1223_v35, 7  ;;  %v3355_v35 = vld [vmem:[%s5911_s2 + $0x760] sm:$0xff]  ;;  %v4484_v38 = vpack.c.bf16 %v3214_v34, %v3213_v33 }
 0x186   :  { %3886 = vmatmul.mubr.msk.f32.vlgmr.msra.gmra.mrb[4].mxu1 %vm131_vm5, %v1060_v49  ;;  %v3342_v49 = vld [vmem:[%s5911_s2 + $0x700] sm:$0xff] }
 0x187   :  { %4440 = vmatpush3.bf16.msra.mxu1 %v4439_v43  ;;  %4629 = vmatpush3.bf16.msra.mxu0 %v4628_v44  ;;  %v1222_v43 = vld [vmem:[#allocation2 + $0xb] sm:$0x1]  ;;  %v2631_v44 = vld [vmem:[#allocation2 + $0x3b] sm:$0x1]  ;;  %v4655_v55 = vpack.c.bf16 %v3343_v50, %v3342_v49  ;;  %v3218_v49 = vld [vmem:[%s5911_s2 + $0x390] sm:$0xff] }
 0x188   :  { %4441 = vmatprep.subr.bf16.mxu1 %v4809_v13  ;;  %4630 = vmatprep.subr.bf16.mxu0 %v4809_v13  ;;  %v1236_v51 = vsel %vm280_vm6, %v1235_v42, %v1222_v43  ;;  %v3357_v42 = vld [vmem:[%s5911_s2 + $0x770] sm:$0xff]  ;;  %v3358_v43 = vld [vmem:[%s5911_s2 + $0x778] sm:$0xff] }
 0x189   :  { %3904 = vmatprep.mubr.msk.f32.mxu1 %vm4810_vm4, %v4811_v32  ;;  %v4676_v48 = vpack.c.bf16 %v3358_v43, %v3357_v42  ;;  %v3219_v50 = vld [vmem:[%s5911_s2 + $0x398] sm:$0xff]  ;;  %v3375_v42 = vld [vmem:[%s5911_s2 + $0x7f0] sm:$0xff] }
 0x18a   :  { %4190 = vmatmul.mubr.msk.f32.vlgmr.msra.gmra.mrb[4].mxu0 %vm131_vm5, %v2468_v58  ;;  %v3344_v58 = vld [vmem:[%s5911_s2 + $0x710] sm:$0xff]  ;;  %v4490_v56 = vpack.c.bf16 %v3219_v50, %v3218_v49  ;;  %v3376_v43 = vld [vmem:[%s5911_s2 + $0x7f8] sm:$0xff] }
 0x18b   :  { %4443 = vmatpush3.bf16.msra.mxu1 %v4442_v52  ;;  %4632 = vmatpush3.bf16.msra.mxu0 %v4631_v53  ;;  %v2643_v52 = vrot.slane %v2631_v44, 7  ;;  %v2630_v53 = vld [vmem:[#allocation2 + $0x1b] sm:$0x1]  ;;  %v2982_v49 = vld [vmem:[#allocation2 + $0x1f] sm:$0x1] }
 0x18c   :  { %4444 = vmatprep.subr.bf16.mxu1 %v4809_v13  ;;  %4633 = vmatprep.subr.bf16.mxu0 %v4809_v13 }
 0x18d   :  { %4208 = vmatprep.mubr.msk.f32.mxu0 %vm4810_vm4, %v4811_v32 }
 0x18f   :  { %4446 = vmatpush3.bf16.msra.mxu1 %v4445_v59  ;;  %4635 = vmatpush3.bf16.msra.mxu0 %v4634_v60  ;;  %v3345_v59 = vld [vmem:[%s5911_s2 + $0x718] sm:$0xff]  ;;  %v2644_v60 = vsel %vm280_vm6, %v2643_v52, %v2630_v53  ;;  %v3361_v52 = vld [vmem:[%s5911_s2 + $0x788] sm:$0xff] }
 0x190   :  { %4447 = vmatprep.subr.bf16.mxu1 %v4809_v13  ;;  %4636 = vmatprep.subr.bf16.mxu0 %v4809_v13  ;;  %v4658_v62 = vpack.c.bf16 %v3345_v59, %v3344_v58  ;;  %v3220_v58 = vld [vmem:[%s5911_s2 + $0x3a0] sm:$0xff]  ;;  %v3221_v59 = vld [vmem:[%s5911_s2 + $0x3a8] sm:$0xff] }
 0x191   :  { %v4493_v63 = vpack.c.bf16 %v3221_v59, %v3220_v58 }
 0x193   :  { %4449 = vmatpush3.bf16.msra.mxu1 %v4448_v2  ;;  %4638 = vmatpush3.bf16.msra.mxu0 %v4637_v3  ;;  %v3347_v2 = vld [vmem:[%s5911_s2 + $0x728] sm:$0xff] }
 0x194   :  { %4450 = vmatprep.subr.bf16.mxu1 %v4809_v13  ;;  %4639 = vmatprep.subr.bf16.mxu0 %v4809_v13  ;;  %v1311_v3 = vld [vmem:[#allocation2 + $0x2c] sm:$0x1]  ;;  %v4661_v5 = vpack.c.bf16 %v3347_v2, %v3346_v1  ;;  %v3222_v1 = vld [vmem:[%s5911_s2 + $0x3b0] sm:$0xff]  ;;  %v3223_v2 = vld [vmem:[%s5911_s2 + $0x3b8] sm:$0xff] }
 0x195   :  { %v1323_v10 = vrot.slane %v1311_v3, 7  ;;  %v3364_v3 = vld [vmem:[%s5911_s2 + $0x7a0] sm:$0xff]  ;;  %v4496_v6 = vpack.c.bf16 %v3223_v2, %v3222_v1 }
 0x196   :  { %3905 = vmatmul.mubr.msk.f32.vlgmr.msra.gmra.mrb[4].mxu1 %vm131_vm5, %v1148_v18  ;;  %v3351_v18 = vld [vmem:[%s5911_s2 + $0x740] sm:$0xff] }
 0x197   :  { %4452 = vmatpush3.bf16.msra.mxu1 %v4451_v11  ;;  %4641 = vmatpush3.bf16.msra.mxu0 %v4640_v12  ;;  %v1310_v11 = vld [vmem:[#allocation2 + $0xc] sm:$0x1]  ;;  %v2719_v12 = vld [vmem:[#allocation2 + $0x3c] sm:$0x1]  ;;  %v4667_v24 = vpack.c.bf16 %v3352_v19, %v3351_v18  ;;  %v3227_v18 = vld [vmem:[%s5911_s2 + $0x3d0] sm:$0xff] }
 0x198   :  { %4453 = vmatprep.subr.bf16.mxu1 %v4809_v13  ;;  %4642 = vmatprep.subr.bf16.mxu0 %v4809_v13  ;;  %v1324_v20 = vsel %vm280_vm6, %v1323_v10, %v1310_v11  ;;  %v3366_v10 = vld [vmem:[%s5911_s2 + $0x7b0] sm:$0xff]  ;;  %v3367_v11 = vld [vmem:[%s5911_s2 + $0x7b8] sm:$0xff] }
 0x199   :  { %3923 = vmatprep.mubr.msk.f32.mxu1 %vm4810_vm4, %v4811_v32  ;;  %v4688_v17 = vpack.c.bf16 %v3367_v11, %v3366_v10  ;;  %v3228_v19 = vld [vmem:[%s5911_s2 + $0x3d8] sm:$0xff] }
 0x19a   :  { %4209 = vmatmul.mubr.msk.f32.vlgmr.msra.gmra.mrb[4].mxu0 %vm131_vm5, %v2556_v27  ;;  %v3353_v27 = vld [vmem:[%s5911_s2 + $0x750] sm:$0xff]  ;;  %v4502_v25 = vpack.c.bf16 %v3228_v19, %v3227_v18 }
 0x19b   :  { %4455 = vmatpush3.bf16.msra.mxu1 %v4454_v21  ;;  %4644 = vmatpush3.bf16.msra.mxu0 %v4643_v22  ;;  %v2731_v21 = vrot.slane %v2719_v12, 7  ;;  %v2718_v22 = vld [vmem:[#allocation2 + $0x1c] sm:$0x1] }
 0x19c   :  { %4456 = vmatprep.subr.bf16.mxu1 %v4809_v13  ;;  %4645 = vmatprep.subr.bf16.mxu0 %v4809_v13 }
 0x19d   :  { %4227 = vmatprep.mubr.msk.f32.mxu0 %vm4810_vm4, %v4811_v32 }
 0x19f   :  { %4458 = vmatpush3.bf16.msra.mxu1 %v4457_v28  ;;  %4647 = vmatpush3.bf16.msra.mxu0 %v4646_v29  ;;  %v3354_v28 = vld [vmem:[%s5911_s2 + $0x758] sm:$0xff]  ;;  %v2732_v29 = vsel %vm280_vm6, %v2731_v21, %v2718_v22  ;;  %v3370_v21 = vld [vmem:[%s5911_s2 + $0x7c8] sm:$0xff] }
 0x1a0   :  { %4459 = vmatprep.subr.bf16.mxu1 %v4809_v13  ;;  %4648 = vmatprep.subr.bf16.mxu0 %v4809_v13  ;;  %v4670_v31 = vpack.c.bf16 %v3354_v28, %v3353_v27  ;;  %v3229_v27 = vld [vmem:[%s5911_s2 + $0x3e0] sm:$0xff]  ;;  %v3230_v28 = vld [vmem:[%s5911_s2 + $0x3e8] sm:$0xff] }
 0x1a1   :  { %v4505_v33 = vpack.c.bf16 %v3230_v28, %v3229_v27 }
 0x1a3   :  { %4461 = vmatpush3.bf16.msra.mxu1 %v4460_v36  ;;  %4650 = vmatpush3.bf16.msra.mxu0 %v4649_v37  ;;  %v3356_v36 = vld [vmem:[%s5911_s2 + $0x768] sm:$0xff] }
 0x1a4   :  { %4462 = vmatprep.subr.bf16.mxu1 %v4809_v13  ;;  %4651 = vmatprep.subr.bf16.mxu0 %v4809_v13  ;;  %v1399_v37 = vld [vmem:[#allocation2 + $0x2d] sm:$0x1]  ;;  %v4673_v39 = vpack.c.bf16 %v3356_v36, %v3355_v35  ;;  %v3231_v35 = vld [vmem:[%s5911_s2 + $0x3f0] sm:$0xff]  ;;  %v3232_v36 = vld [vmem:[%s5911_s2 + $0x3f8] sm:$0xff] }
 0x1a5   :  { %v1411_v44 = vrot.slane %v1399_v37, 7  ;;  %v3373_v37 = vld [vmem:[%s5911_s2 + $0x7e0] sm:$0xff]  ;;  %v4508_v40 = vpack.c.bf16 %v3232_v36, %v3231_v35 }
 0x1a6   :  { %3924 = vmatmul.mubr.msk.f32.vlgmr.msra.gmra.mrb[4].mxu1 %vm131_vm5, %v1236_v51  ;;  %v3360_v51 = vld [vmem:[%s5911_s2 + $0x780] sm:$0xff] }
 0x1a7   :  { %4464 = vmatpush3.bf16.msra.mxu1 %v4463_v45  ;;  %4653 = vmatpush3.bf16.msra.mxu0 %v4652_v46  ;;  %v1398_v45 = vld [vmem:[#allocation2 + $0xd] sm:$0x1]  ;;  %v2807_v46 = vld [vmem:[#allocation2 + $0x3d] sm:$0x1]  ;;  %v4679_v57 = vpack.c.bf16 %v3361_v52, %v3360_v51 }
 0x1a8   :  { %4465 = vmatprep.subr.bf16.mxu1 %v4809_v13  ;;  %4654 = vmatprep.subr.bf16.mxu0 %v4809_v13  ;;  %v1412_v53 = vsel %vm280_vm6, %v1411_v44, %v1398_v45  ;;  %v1574_v45 = vld [vmem:[#allocation2 + $0xf] sm:$0x1] }
 0x1a9   :  { %3942 = vmatprep.mubr.msk.f32.mxu1 %vm4810_vm4, %v4811_v32 }
 0x1aa   :  { %4228 = vmatmul.mubr.msk.f32.vlgmr.msra.gmra.mrb[4].mxu0 %vm131_vm5, %v2644_v60  ;;  %v3362_v60 = vld [vmem:[%s5911_s2 + $0x790] sm:$0xff] }
 0x1ab   :  { %4467 = vmatpush3.bf16.msra.mxu1 %v4466_v54  ;;  %4656 = vmatpush3.bf16.msra.mxu0 %v4655_v55  ;;  %v2819_v54 = vrot.slane %v2807_v46, 7  ;;  %v2806_v55 = vld [vmem:[#allocation2 + $0x1d] sm:$0x1]  ;;  %v4700_v46 = vpack.c.bf16 %v3376_v43, %v3375_v42 }
 0x1ac   :  { %4468 = vmatprep.subr.bf16.mxu1 %v4809_v13  ;;  %4657 = vmatprep.subr.bf16.mxu0 %v4809_v13 }
 0x1ad   :  { %4246 = vmatprep.mubr.msk.f32.mxu0 %vm4810_vm4, %v4811_v32 }
 0x1af   :  { %4470 = vmatpush3.bf16.msra.mxu1 %v4469_v61  ;;  %4659 = vmatpush3.bf16.msra.mxu0 %v4658_v62  ;;  %v3363_v61 = vld [vmem:[%s5911_s2 + $0x798] sm:$0xff]  ;;  %v2820_v62 = vsel %vm280_vm6, %v2819_v54, %v2806_v55 }
 0x1b0   :  { %4471 = vmatprep.subr.bf16.mxu1 %v4809_v13  ;;  %4660 = vmatprep.subr.bf16.mxu0 %v4809_v13  ;;  %v4682_v0 = vpack.c.bf16 %v3363_v61, %v3362_v60 }
 0x1b3   :  { %4473 = vmatpush3.bf16.msra.mxu1 %v4472_v4  ;;  %4662 = vmatpush3.bf16.msra.mxu0 %v4661_v5  ;;  %v3365_v4 = vld [vmem:[%s5911_s2 + $0x7a8] sm:$0xff] }
 0x1b4   :  { %4474 = vmatprep.subr.bf16.mxu1 %v4809_v13  ;;  %4663 = vmatprep.subr.bf16.mxu0 %v4809_v13  ;;  %v1487_v5 = vld [vmem:[#allocation2 + $0x2e] sm:$0x1]  ;;  %v4685_v7 = vpack.c.bf16 %v3365_v4, %v3364_v3 }
 0x1b5   :  { %v1499_v12 = vrot.slane %v1487_v5, 7 }
 0x1b6   :  { %3943 = vmatmul.mubr.msk.f32.vlgmr.msra.gmra.mrb[4].mxu1 %vm131_vm5, %v1324_v20  ;;  %v3369_v20 = vld [vmem:[%s5911_s2 + $0x7c0] sm:$0xff] }
 0x1b7   :  { %4476 = vmatpush3.bf16.msra.mxu1 %v4475_v14  ;;  %4665 = vmatpush3.bf16.msra.mxu0 %v4664_v15  ;;  %v1486_v14 = vld [vmem:[#allocation2 + $0xe] sm:$0x1]  ;;  %v2895_v15 = vld [vmem:[#allocation2 + $0x3e] sm:$0x1]  ;;  %v4691_v26 = vpack.c.bf16 %v3370_v21, %v3369_v20 }
 0x1b8   :  { %4477 = vmatprep.subr.bf16.mxu1 %v4809_v13  ;;  %4666 = vmatprep.subr.bf16.mxu0 %v4809_v13  ;;  %v1500_v22 = vsel %vm280_vm6, %v1499_v12, %v1486_v14 }
 0x1b9   :  { %3961 = vmatprep.mubr.msk.f32.mxu1 %vm4810_vm4, %v4811_v32 }
 0x1ba   :  { %4247 = vmatmul.mubr.msk.f32.vlgmr.msra.gmra.mrb[4].mxu0 %vm131_vm5, %v2732_v29  ;;  %v3371_v29 = vld [vmem:[%s5911_s2 + $0x7d0] sm:$0xff] }
 0x1bb   :  { %4479 = vmatpush3.bf16.msra.mxu1 %v4478_v23  ;;  %4668 = vmatpush3.bf16.msra.mxu0 %v4667_v24  ;;  %v2907_v23 = vrot.slane %v2895_v15, 7  ;;  %v2894_v24 = vld [vmem:[#allocation2 + $0x1e] sm:$0x1] }
 0x1bc   :  { %4480 = vmatprep.subr.bf16.mxu1 %v4809_v13  ;;  %4669 = vmatprep.subr.bf16.mxu0 %v4809_v13 }
 0x1bd   :  { %4265 = vmatprep.mubr.msk.f32.mxu0 %vm4810_vm4, %v4811_v32 }
 0x1bf   :  { %4482 = vmatpush3.bf16.msra.mxu1 %v4481_v30  ;;  %4671 = vmatpush3.bf16.msra.mxu0 %v4670_v31  ;;  %v3372_v30 = vld [vmem:[%s5911_s2 + $0x7d8] sm:$0xff]  ;;  %v2908_v31 = vsel %vm280_vm6, %v2907_v23, %v2894_v24 }
 0x1c0   :  { %4483 = vmatprep.subr.bf16.mxu1 %v4809_v13  ;;  %4672 = vmatprep.subr.bf16.mxu0 %v4809_v13  ;;  %v4694_v34 = vpack.c.bf16 %v3372_v30, %v3371_v29 }
 0x1c3   :  { %4485 = vmatpush3.bf16.msra.mxu1 %v4484_v38  ;;  %4674 = vmatpush3.bf16.msra.mxu0 %v4673_v39  ;;  %v3374_v38 = vld [vmem:[%s5911_s2 + $0x7e8] sm:$0xff]  ;;  %s4812_s2 = smov [#allocation3]  }
 0x1c4   :  { %4486 = vmatprep.subr.bf16.mxu1 %v4809_v13  ;;  %4675 = vmatprep.subr.bf16.mxu0 %v4809_v13  ;;  %v1575_v39 = vld [vmem:[#allocation2 + $0x2f] sm:$0x1]  ;;  %v4697_v41 = vpack.c.bf16 %v3374_v38, %v3373_v37  ;;  %s3078_s18 = sshll.u32 %s4812_s2, 4  ;;  %s3079_s18 = int_to_ptr.vmem [resolvable:$true] %s3078_s18 }
 0x1c5   :  { %v1587_v44 = vrot.slane %v1575_v39, 7  ;;  %s4784_s19 = scalar_lea.vmem %s3079_s18, 32  ;;  %p4789_p1 = scmp.lt.s32.totalorder %s3079_s18, %s3079_s18 }
 0x1c6   :  { %3962 = vmatmul.mubr.msk.f32.vlgmr.msra.gmra.mrb[4].mxu1 %vm131_vm5, %v1412_v53  ;;  %p4785_p0 = scmp.ne.s32.totalorder %s3079_s18, %s4784_s19  ;;  %p4790_p2 = scmp.lt.s32.totalorder %s4784_s19, %s4784_s19 }
 0x1c7   :  { %4488 = vmatpush3.bf16.msra.mxu1 %v4487_v47  ;;  %4677 = vmatpush3.bf16.msra.mxu0 %v4676_v48  ;;  %v1588_v47 = vsel %vm280_vm6, %v1587_v44, %v1574_v45 }
 0x1c8   :  { %4489 = vmatprep.subr.bf16.mxu1 %v4809_v13  ;;  %4678 = vmatprep.subr.bf16.mxu0 %v4809_v13  ;;  %p4791_p3 = por %p4790_p2, %p4789_p1 }
 0x1c9   :  { %3980 = vmatprep.mubr.msk.f32.mxu1 %vm4810_vm4, %v4811_v32 }
 0x1ca   :  { %4266 = vmatmul.mubr.msk.f32.vlgmr.msra.gmra.mrb[4].mxu0 %vm131_vm5, %v2820_v62  ;;  %p4792_p4 = pnand %p4791_p3, %p4785_p0 }
 0x1cb   :  { %4491 = vmatpush3.bf16.msra.mxu1 %v4490_v56  ;;  %4680 = vmatpush3.bf16.msra.mxu0 %v4679_v57 }
 0x1cc   :  { %4492 = vmatprep.subr.bf16.mxu1 %v4809_v13  ;;  %4681 = vmatprep.subr.bf16.mxu0 %v4809_v13 }
 0x1cd   :  { %4284 = vmatprep.mubr.msk.f32.mxu0 %vm4810_vm4, %v4811_v32 }
 0x1cf   :  { %4494 = vmatpush3.bf16.msra.mxu1 %v4493_v63  ;;  %4683 = vmatpush3.bf16.msra.mxu0 %v4682_v0 }
 0x1d0   :  { %4495 = vmatprep.subr.bf16.mxu1 %v4809_v13  ;;  %4684 = vmatprep.subr.bf16.mxu0 %v4809_v13 }
 0x1d3   :  { %4497 = vmatpush3.bf16.msra.mxu1 %v4496_v6  ;;  %4686 = vmatpush3.bf16.msra.mxu0 %v4685_v7 }
 0x1d4   :  { %4498 = vmatprep.subr.bf16.mxu1 %v4809_v13  ;;  %4687 = vmatprep.subr.bf16.mxu0 %v4809_v13 }
 0x1d6   :  { %3981 = vmatmul.mubr.msk.f32.vlgmr.msra.gmra.mrb[4].mxu1 %vm131_vm5, %v1500_v22 }
 0x1d7   :  { %4500 = vmatpush3.bf16.msra.mxu1 %v4499_v16  ;;  %4689 = vmatpush3.bf16.msra.mxu0 %v4688_v17 }
 0x1d8   :  { %4501 = vmatprep.subr.bf16.mxu1 %v4809_v13  ;;  %4690 = vmatprep.subr.bf16.mxu0 %v4809_v13 }
 0x1d9   :  { %3999 = vmatprep.mubr.msk.f32.mxu1 %vm4810_vm4, %v4811_v32 }
 0x1da   :  { %4285 = vmatmul.mubr.msk.f32.vlgmr.msra.gmra.mrb[4].mxu0 %vm131_vm5, %v2908_v31 }
 0x1db   :  { %4503 = vmatpush3.bf16.msra.mxu1 %v4502_v25  ;;  %4692 = vmatpush3.bf16.msra.mxu0 %v4691_v26 }
 0x1dc   :  { %4504 = vmatprep.subr.bf16.mxu1 %v4809_v13  ;;  %4693 = vmatprep.subr.bf16.mxu0 %v4809_v13 }
 0x1dd   :  { %4303 = vmatprep.mubr.msk.f32.mxu0 %vm4810_vm4, %v4811_v32  ;;  %v2983_v32 = vld [vmem:[#allocation2 + $0x3f] sm:$0x1] }
 0x1de   :  { %v2995_v48 = vrot.slane %v2983_v32, 7 }
 0x1df   :  { %4506 = vmatpush3.bf16.msra.mxu1 %v4505_v33  ;;  %4695 = vmatpush3.bf16.msra.mxu0 %v4694_v34 }
 0x1e0   :  { %4507 = vmatprep.subr.bf16.mxu1 %v4809_v13  ;;  %4696 = vmatprep.subr.bf16.mxu0 %v4809_v13  ;;  %v2996_v50 = vsel %vm280_vm6, %v2995_v48, %v2982_v49 }
 0x1e3   :  { %4509 = vmatpush3.bf16.msra.mxu1 %v4508_v40  ;;  %4698 = vmatpush3.bf16.msra.mxu0 %v4697_v41 }
 0x1e4   :  { %4699 = vmatprep.subr.bf16.mxu0 %v4809_v13 }
 0x1e6   :  { %4000 = vmatmul.mubr.msk.f32.vlgmr.msra.gmra.mrb[4].mxu1 %vm131_vm5, %v1588_v47 }
 0x1e7   :  { %4701 = vmatpush3.bf16.msra.mxu0 %v4700_v46 }
 0x1ea   :  { %4304 = vmatmul.mubr.msk.f32.vlgmr.msra.gmra.mrb[4].mxu0 %vm131_vm5, %v2996_v50 }
 0x2b9   :  { %v1657_v51 = vpop.f32.mrb[4].mxu1 }
 0x2ba   :  { %v4001_v52 = vpop.f32.mrb[5].mxu1 }
 0x2bd   :  { %v3065_v53 = vpop.f32.mrb[4].mxu0 }
 0x2be   :  { %v4702_v54 = vadd.f32 %v3065_v53, %v1657_v51  ;;  %v4305_v55 = vpop.f32.mrb[5].mxu0 }
 0x2c0   :  { %3071 = vst.msk [vmem:[#allocation3] sm:$0x3] %vm3070_vm7, %v4702_v54 }
 0x2c1   :  { %4795 = shalt.err (!%p4792_p4)
}
 0x2c2   :  { %s4796_s22 = scalar_lea.hbm %s5912_s3, 32 }
 0x2c3   :  { %p4797_p5 = scmp.ne.s32.totalorder %s5912_s3, %s4796_s22  ;;  %p4800_p6 = scmp.lt.u32.totalorder %s4796_s22, %s5912_s3 }
 0x2c5   :  { %p4802_p7 = pnand %p4800_p6, %p4797_p5 }
 0x2c7   :  { %4805 = shalt.err (!%p4802_p7)
}
 0x2c8   :  { %3081 = dma.vmem_to_hbm [thread:$0]  %s3079_s18, 32, %s5912_s3, [#allocation4]  }
 0x2c9   :  { %4806 = dma.done.wait [#allocation4], 32  }
 0x2ca   :  { %4807 = vsyncadd [#allocation4], 4294967264 }
 0x2cb   :  { %3085 = vsyncpa [#allocation4], 1 }

</bundles_post_ra>
